<compile_context>
chip_gen: v5e
topology: v5e:2x2
jax: 0.10.0
libtpu: 0.0.40
codegen_flags: <defaults>
</compile_context>

<pallas_src>
import functools
import math

import jax
import jax.numpy as jnp
from jax import lax
from jax.experimental import pallas as pl
from jax.experimental.pallas import tpu as pltpu


_LANE = 128
_SUBLANE = 8
_VMEM_LIMIT_BYTES = 48 * 1024 * 1024   # < 64 MiB (v7x/TC), > 16 MiB v5e default
_VMEM_TILE_BUDGET = 32 * 1024 * 1024   # budget used when sizing the M tile


def _round_up(a, b):
    return (a + b - 1) // b * b


# ---------------------------------------------------------------------------
# Pallas kernels
# ---------------------------------------------------------------------------
def conv_stats_kernel(x_ref, w_ref, y_ref, sum_ref, ssq_ref):
    """Matmul (== conv after im2col) + per-channel sum / sum-of-squares.

    Grid: (n_chunks, tiles_per_chunk).  The leading chunk axis is "parallel"
    (feeds both TensorCores on v7x); the inner axis is the "arbitrary"
    reduction axis, across which the per-chunk stats blocks stay resident.
    """
    @pl.when(pl.program_id(1) == 0)
    def _init():
        sum_ref[...] = jnp.zeros_like(sum_ref)
        ssq_ref[...] = jnp.zeros_like(ssq_ref)

    y = jnp.dot(x_ref[...], w_ref[...], preferred_element_type=jnp.float32)
    y_ref[...] = y

    # Padded (zero) rows / channels contribute exactly 0 to both statistics.
    tile_sum = jnp.sum(y, axis=0, keepdims=True)       # (1, Cpad)
    tile_ssq = jnp.sum(y * y, axis=0, keepdims=True)   # (1, Cpad)
    # Accumulate only into sublane 0 of the (8, Cpad) stats block so a plain
    # column sum in kernel 2 recovers the exact totals.
    row0 = lax.broadcasted_iota(jnp.int32, sum_ref.shape, 0) == 0
    sum_ref[...] += jnp.where(row0, tile_sum, 0.0)
    ssq_ref[...] += jnp.where(row0, tile_ssq, 0.0)


def bn_relu_kernel(y_ref, sum_ref, ssq_ref, o_ref, *, inv_count, eps):
    """Fused BN (gamma=1, beta=0, batch stats) + ReLU, in place over y."""
    ch_sum = jnp.sum(sum_ref[...], axis=0, keepdims=True)   # (1, Cpad)
    ch_ssq = jnp.sum(ssq_ref[...], axis=0, keepdims=True)   # (1, Cpad)
    mean = ch_sum * inv_count
    # E[y^2] - E[y]^2 can go slightly negative from cancellation; clamp at 0.
    # TODO(synk): two-pass (centered) variance for production-scale M.
    var = jnp.maximum(ch_ssq * inv_count - mean * mean, 0.0)
    invstd = lax.rsqrt(var + eps)
    o_ref[...] = jnp.maximum((y_ref[...] - mean) * invstd, 0.0)


# ---------------------------------------------------------------------------
# Glue (plain JAX): im2col, tiling choice, reshapes
# ---------------------------------------------------------------------------
def _im2col(x, kh, kw, stride, padding):
    """x: [N, C, H, W] -> patches [N, C*kh*kw, Ho, Wo] (C-major, then kh, kw)."""
    N, C, H, W = x.shape
    xp = jnp.pad(x, ((0, 0), (0, 0), (padding, padding), (padding, padding)))
    Ho = (H + 2 * padding - kh) // stride + 1
    Wo = (W + 2 * padding - kw) // stride + 1
    cols = []
    for i in range(kh):
        for j in range(kw):
            cols.append(xp[:, :, i:i + stride * Ho:stride, j:j + stride * Wo:stride])
    patches = jnp.stack(cols, axis=2)            # [N, C, kh*kw, Ho, Wo]
    patches = patches.reshape(N, C * kh * kw, Ho, Wo)
    return patches, Ho, Wo


def _choose_tile_m(M, K, c_pad, budget=_VMEM_TILE_BUDGET):
    """Largest M tile (<=1024 rows) whose double-buffered X + y tiles fit."""
    k_lanes = _round_up(max(K, 1), _LANE)                 # VMEM lane padding of X
    w_bytes = 2 * _round_up(K, _SUBLANE) * c_pad * 4      # (double-buffered) weights
    avail = max(budget - w_bytes, 4 * 1024 * 1024)
    bytes_per_row = 4 * 2 * (k_lanes + c_pad)             # X tile + y tile, x2 buffers
    tm = avail // bytes_per_row
    tm = min(tm, 1024, _round_up(M, _SUBLANE))
    if tm >= _LANE:
        tm = (tm // _LANE) * _LANE
    else:
        tm = max(_SUBLANE, (tm // _SUBLANE) * _SUBLANE)
    # TODO(synk): for very large K (e.g. 3x3 with Cin>=2048) add a K grid axis
    # with an f32 accumulator scratch instead of shrinking TM to 8.
    return int(tm)


@functools.partial(jax.jit, static_argnames=("stride", "padding", "compute_dtype"))
def conv_bn_relu(x, weight, *, stride=1, padding=0, compute_dtype=jnp.float32):
    """Forward of Conv_BN_ReLU. x: [N, Cin, H, W] NCHW, weight: [Cout, Cin, kh, kw]."""
    eps = 1e-5
    N, Cin, H, W = x.shape
    Cout, _, kh, kw = weight.shape

    x = x.astype(jnp.float32)
    weight = weight.astype(jnp.float32)

    # ---- lower conv to a single matmul (im2col); NCHW only at the boundary.
    if kh == 1 and kw == 1 and padding == 0:
        xs = x if stride == 1 else x[:, :, ::stride, ::stride]
        Ho, Wo = xs.shape[2], xs.shape[3]
        K = Cin
        X2d = xs.transpose(0, 2, 3, 1).reshape(-1, K)             # [M, Cin]
    else:
        # TODO(synk): for kh*kw > 1 move patch extraction into the kernel
        # (grid axis over taps w/ shifted index_maps) to avoid materializing
        # kh*kw copies of the input in HBM.
        patches, Ho, Wo = _im2col(x, kh, kw, stride, padding)
        K = Cin * kh * kw
        X2d = patches.transpose(0, 2, 3, 1).reshape(-1, K)        # [M, K]

    M = N * Ho * Wo
    Cpad = _round_up(Cout, _LANE)                                 # lane-dense channels
    W2d = weight.reshape(Cout, K).T                               # [K, Cout]
    W2d = jnp.pad(W2d, ((0, 0), (0, Cpad - Cout)))                # [K, Cpad]

    TM = _choose_tile_m(M, K, Cpad)
    total_tiles = -(-M // TM)
    n_chunks = 2 if total_tiles >= 2 else 1     # both TCs on v7x; harmless on 1-TC chips
    tpc = -(-total_tiles // n_chunks)           # tiles per chunk
    Mp = n_chunks * tpc * TM
    if Mp != M:
        X2d = jnp.pad(X2d, ((0, Mp - M), (0, 0)))

    if compute_dtype != jnp.float32:            # e.g. jnp.bfloat16: bf16-native MXUs
        X2d = X2d.astype(compute_dtype)
        W2d = W2d.astype(compute_dtype)

    row_map = lambda c, i: (c * tpc + i, 0)

    # --- kernel 1: conv (matmul) + per-chunk BN statistics -----------------
    y2d, part_sum, part_ssq = pl.pallas_call(
        conv_stats_kernel,
        out_shape=(
            jax.ShapeDtypeStruct((Mp, Cpad), jnp.float32),
            jax.ShapeDtypeStruct((_SUBLANE * n_chunks, Cpad), jnp.float32),
            jax.ShapeDtypeStruct((_SUBLANE * n_chunks, Cpad), jnp.float32),
        ),
        grid_spec=pltpu.PrefetchScalarGridSpec(
            num_scalar_prefetch=0,
            grid=(n_chunks, tpc),
            in_specs=[
                pl.BlockSpec((TM, K), row_map),
                pl.BlockSpec((K, Cpad), lambda c, i: (0, 0)),
            ],
            out_specs=(
                pl.BlockSpec((TM, Cpad), row_map),
                pl.BlockSpec((_SUBLANE, Cpad), lambda c, i: (c, 0)),
                pl.BlockSpec((_SUBLANE, Cpad), lambda c, i: (c, 0)),
            ),
        ),
        compiler_params=pltpu.CompilerParams(
            dimension_semantics=("parallel", "arbitrary"),
            vmem_limit_bytes=_VMEM_LIMIT_BYTES,
        ),
    )(X2d, W2d)

    # --- kernel 2: fused mean/inv-std + normalize + ReLU, in place ---------
    out2d = pl.pallas_call(
        functools.partial(bn_relu_kernel, inv_count=1.0 / M, eps=eps),
        out_shape=jax.ShapeDtypeStruct((Mp, Cpad), jnp.float32),
        grid_spec=pltpu.PrefetchScalarGridSpec(
            num_scalar_prefetch=0,
            grid=(Mp // TM,),
            in_specs=[
                pl.BlockSpec((TM, Cpad), lambda i: (i, 0)),
                pl.BlockSpec((_SUBLANE * n_chunks, Cpad), lambda i: (0, 0)),
                pl.BlockSpec((_SUBLANE * n_chunks, Cpad), lambda i: (0, 0)),
            ],
            out_specs=pl.BlockSpec((TM, Cpad), lambda i: (i, 0)),
        ),
        input_output_aliases={0: 0},   # normalize y2d in place (no extra HBM buffer)
        compiler_params=pltpu.CompilerParams(
            dimension_semantics=("parallel",),
            vmem_limit_bytes=_VMEM_LIMIT_BYTES,
        ),
    )(y2d, part_sum, part_ssq)

    out = out2d[:M, :Cout].reshape(N, Ho, Wo, Cout).transpose(0, 3, 1, 2)  # NCHW
    return out


# ---------------------------------------------------------------------------
# Reference (pure JAX/XLA) for correctness check
# ---------------------------------------------------------------------------
def conv_bn_relu_ref(x, weight, *, stride=1, padding=0):
    eps = 1e-5
    y = lax.conv_general_dilated(
        x.astype(jnp.float32), weight.astype(jnp.float32),
        window_strides=(stride, stride),
        padding=[(padding, padding), (padding, padding)],
        dimension_numbers=("NCHW", "OIHW", "NCHW"))
    mean = jnp.mean(y, axis=(0, 2, 3), keepdims=True)
    var = jnp.mean((y - mean) ** 2, axis=(0, 2, 3), keepdims=True)
    return jnp.maximum((y - mean) * lax.rsqrt(var + eps), 0.0)


def _make_inputs(key, batch, in_planes, out_planes, kernel_size, spatial):
    kx, kw = jax.random.split(key)
    x = jax.random.normal(kx, (batch, in_planes, spatial, spatial), dtype=jnp.float32)
    # Deterministic init matching the PyTorch module:
    # conv.weight ~ N(0, sqrt(2 / (kh*kw*out_planes))); BN gamma=1, beta=0.
    n = kernel_size * kernel_size * out_planes
    weight = jax.random.normal(
        kw, (out_planes, in_planes, kernel_size, kernel_size), dtype=jnp.float32
    ) * math.sqrt(2.0 / n)
    return x, weight


if __name__ == "__main__":
    key = jax.random.PRNGKey(0)
    k1, k2 = jax.random.split(key)

    # Config 1: module defaults (kernel_size=1, stride=1, padding=0).
    x1, w1 = _make_inputs(k1, batch=2, in_planes=4, out_planes=8,
                          kernel_size=1, spatial=16)
    out1 = jax.block_until_ready(conv_bn_relu(x1, w1, stride=1, padding=0))
    ref1 = jax.block_until_ready(conv_bn_relu_ref(x1, w1, stride=1, padding=0))
    assert out1.shape == ref1.shape == (2, 8, 16, 16)
    assert jnp.allclose(out1, ref1, atol=5e-4, rtol=5e-4), \
        float(jnp.max(jnp.abs(out1 - ref1)))

    # Config 2: 3x3 conv, pad=1 — exercises im2col, multi-tile grid and the
    # 2-chunk parallel statistics path.
    x2, w2 = _make_inputs(k2, batch=4, in_planes=4, out_planes=8,
                          kernel_size=3, spatial=32)
    out2 = jax.block_until_ready(conv_bn_relu(x2, w2, stride=1, padding=1))
    ref2 = jax.block_until_ready(conv_bn_relu_ref(x2, w2, stride=1, padding=1))
    assert out2.shape == ref2.shape == (4, 8, 32, 32)
    assert jnp.allclose(out2, ref2, atol=5e-4, rtol=5e-4), \
        float(jnp.max(jnp.abs(out2 - ref2)))

    print("KERNEL_OK")
</pallas_src>

<mosaic_0001>
module attributes {stable_mosaic.version = 11 : i64} {
  func.func @bn_relu_kernel(%arg0: i32, %arg1: memref<512x128xf32, #tpu.memory_space<vmem>>, %arg2: memref<8x128xf32, #tpu.memory_space<vmem>>, %arg3: memref<8x128xf32, #tpu.memory_space<vmem>>, %arg4: memref<512x128xf32, #tpu.memory_space<vmem>>) attributes {dimension_semantics = [#tpu.dimension_semantics<parallel>], iteration_bounds = array<i64: 1>, scalar_prefetch = 0 : i64, scratch_operands = 0 : i64, tpu.core_type = #tpu.core_type<tc>, window_params = [{transform_indices = @transform_0, window_bounds = array<i64: 512, 128>}, {pipeline_mode = #tpu.pipeline_mode<synchronous>, transform_indices = @transform_1, window_bounds = array<i64: 8, 128>}, {pipeline_mode = #tpu.pipeline_mode<synchronous>, transform_indices = @transform_2, window_bounds = array<i64: 8, 128>}, {transform_indices = @transform_3, window_bounds = array<i64: 512, 128>}]} {
    %c0 = arith.constant 0 : index
    %c0_0 = arith.constant 0 : index
    %0 = vector.load %arg2[%c0, %c0_0] : memref<8x128xf32, #tpu.memory_space<vmem>>, vector<8x128xf32>
    %cst = arith.constant dense<0.000000e+00> : vector<128xf32>
    %1 = vector.multi_reduction <add>, %0, %cst [0] : vector<8x128xf32> to vector<128xf32>
    %2 = vector.shape_cast %1 : vector<128xf32> to vector<1x128xf32>
    %c0_1 = arith.constant 0 : index
    %c0_2 = arith.constant 0 : index
    %3 = vector.load %arg3[%c0_1, %c0_2] : memref<8x128xf32, #tpu.memory_space<vmem>>, vector<8x128xf32>
    %cst_3 = arith.constant dense<0.000000e+00> : vector<128xf32>
    %4 = vector.multi_reduction <add>, %3, %cst_3 [0] : vector<8x128xf32> to vector<128xf32>
    %5 = vector.shape_cast %4 : vector<128xf32> to vector<1x128xf32>
    %cst_4 = arith.constant 0.001953125 : f32
    %6 = vector.broadcast %cst_4 : f32 to vector<1x128xf32>
    %7 = arith.mulf %2, %6 : vector<1x128xf32>
    %cst_5 = arith.constant 0.001953125 : f32
    %8 = vector.broadcast %cst_5 : f32 to vector<1x128xf32>
    %9 = arith.mulf %5, %8 : vector<1x128xf32>
    %10 = arith.mulf %7, %7 : vector<1x128xf32>
    %11 = arith.subf %9, %10 : vector<1x128xf32>
    %cst_6 = arith.constant 0.000000e+00 : f32
    %12 = vector.broadcast %cst_6 : f32 to vector<1x128xf32>
    %13 = arith.maximumf %11, %12 : vector<1x128xf32>
    %cst_7 = arith.constant 9.99999974E-6 : f32
    %14 = vector.broadcast %cst_7 : f32 to vector<1x128xf32>
    %15 = arith.addf %13, %14 : vector<1x128xf32>
    %16 = math.rsqrt %15 : vector<1x128xf32>
    %c0_8 = arith.constant 0 : index
    %c0_9 = arith.constant 0 : index
    %17 = vector.load %arg1[%c0_8, %c0_9] : memref<512x128xf32, #tpu.memory_space<vmem>>, vector<512x128xf32>
    %18 = vector.broadcast %7 : vector<1x128xf32> to vector<512x128xf32>
    %19 = arith.subf %17, %18 : vector<512x128xf32>
    %20 = vector.broadcast %16 : vector<1x128xf32> to vector<512x128xf32>
    %21 = arith.mulf %19, %20 : vector<512x128xf32>
    %cst_10 = arith.constant 0.000000e+00 : f32
    %22 = vector.broadcast %cst_10 : f32 to vector<512x128xf32>
    %23 = arith.maximumf %21, %22 : vector<512x128xf32>
    %c0_11 = arith.constant 0 : index
    %c0_12 = arith.constant 0 : index
    %24 = vector.load %arg4[%c0_11, %c0_12] : memref<512x128xf32, #tpu.memory_space<vmem>>, vector<512x128xf32>
    tpu.vector_store %arg4[%c0_11, %c0_12], %23 {strides = array<i32>} : memref<512x128xf32, #tpu.memory_space<vmem>>, vector<512x128xf32>,
    return
  }
  func.func @transform_0(%arg0: i32) -> (i32, i32) {
    %c0_i32 = arith.constant 0 : i32
    %c0_i32_0 = arith.constant 0 : i32
    return %arg0, %c0_i32 : i32, i32
  }
  func.func @transform_1(%arg0: i32) -> (i32, i32) {
    %c0_i32 = arith.constant 0 : i32
    %c0_i32_0 = arith.constant 0 : i32
    %c0_i32_1 = arith.constant 0 : i32
    return %c0_i32, %c0_i32_0 : i32, i32
  }
  func.func @transform_2(%arg0: i32) -> (i32, i32) {
    %c0_i32 = arith.constant 0 : i32
    %c0_i32_0 = arith.constant 0 : i32
    %c0_i32_1 = arith.constant 0 : i32
    return %c0_i32, %c0_i32_0 : i32, i32
  }
  func.func @transform_3(%arg0: i32) -> (i32, i32) {
    %c0_i32 = arith.constant 0 : i32
    %c0_i32_0 = arith.constant 0 : i32
    return %arg0, %c0_i32 : i32, i32
  }
}

module attributes {stable_mosaic.version = 11 : i64} {
  func.func @conv_stats_kernel(%arg0: i32, %arg1: i32, %arg2: memref<512x4xf32, #tpu.memory_space<vmem>>, %arg3: memref<4x128xf32, #tpu.memory_space<vmem>>, %arg4: memref<512x128xf32, #tpu.memory_space<vmem>>, %arg5: memref<8x128xf32, #tpu.memory_space<vmem>>, %arg6: memref<8x128xf32, #tpu.memory_space<vmem>>) attributes {dimension_semantics = [#tpu.dimension_semantics<parallel>, #tpu.dimension_semantics<arbitrary>], iteration_bounds = array<i64: 1, 1>, scalar_prefetch = 0 : i64, scratch_operands = 0 : i64, tpu.core_type = #tpu.core_type<tc>, window_params = [{transform_indices = @transform_0, window_bounds = array<i64: 512, 4>}, {pipeline_mode = #tpu.pipeline_mode<synchronous>, transform_indices = @transform_1, window_bounds = array<i64: 4, 128>}, {transform_indices = @transform_2, window_bounds = array<i64: 512, 128>}, {transform_indices = @transform_3, window_bounds = array<i64: 8, 128>}, {transform_indices = @transform_4, window_bounds = array<i64: 8, 128>}]} {
    %c0_i32 = arith.constant 0 : i32
    %0 = arith.cmpi eq, %arg1, %c0_i32 : i32
    %1 = arith.extui %0 : i1 to i32
    %c0_i32_0 = arith.constant 0 : i32
    %2 = arith.cmpi ne, %1, %c0_i32_0 : i32
    scf.if %2 {
      %cst_19 = arith.constant 0.000000e+00 : f32
      %29 = vector.broadcast %cst_19 : f32 to vector<8x128xf32>
      %c0_20 = arith.constant 0 : index
      %c0_21 = arith.constant 0 : index
      %30 = vector.load %arg5[%c0_20, %c0_21] : memref<8x128xf32, #tpu.memory_space<vmem>>, vector<8x128xf32>
      tpu.vector_store %arg5[%c0_20, %c0_21], %29 {strides = array<i32>} : memref<8x128xf32, #tpu.memory_space<vmem>>, vector<8x128xf32>,
      %cst_22 = arith.constant 0.000000e+00 : f32
      %31 = vector.broadcast %cst_22 : f32 to vector<8x128xf32>
      %c0_23 = arith.constant 0 : index
      %c0_24 = arith.constant 0 : index
      %32 = vector.load %arg6[%c0_23, %c0_24] : memref<8x128xf32, #tpu.memory_space<vmem>>, vector<8x128xf32>
      tpu.vector_store %arg6[%c0_23, %c0_24], %31 {strides = array<i32>} : memref<8x128xf32, #tpu.memory_space<vmem>>, vector<8x128xf32>,
    } else {
    }
    %c0 = arith.constant 0 : index
    %c0_1 = arith.constant 0 : index
    %3 = vector.load %arg2[%c0, %c0_1] : memref<512x4xf32, #tpu.memory_space<vmem>>, vector<512x4xf32>
    %c0_2 = arith.constant 0 : index
    %c0_3 = arith.constant 0 : index
    %4 = vector.load %arg3[%c0_2, %c0_3] : memref<4x128xf32, #tpu.memory_space<vmem>>, vector<4x128xf32>
    %cst = arith.constant dense<0.000000e+00> : vector<512x128xf32>
    %5 = tpu.matmul %3, %4, %cst {dimension_numbers = #tpu.dot_dimension_numbers<[1], [0], [0], [1], [0, 0, 1, 1], [], []>} : vector<512x4xf32>, vector<4x128xf32>, vector<512x128xf32> -> vector<512x128xf32>
    %c0_4 = arith.constant 0 : index
    %c0_5 = arith.constant 0 : index
    %6 = vector.load %arg4[%c0_4, %c0_5] : memref<512x128xf32, #tpu.memory_space<vmem>>, vector<512x128xf32>
    tpu.vector_store %arg4[%c0_4, %c0_5], %5 {strides = array<i32>} : memref<512x128xf32, #tpu.memory_space<vmem>>, vector<512x128xf32>,
    %cst_6 = arith.constant dense<0.000000e+00> : vector<128xf32>
    %7 = vector.multi_reduction <add>, %5, %cst_6 [0] : vector<512x128xf32> to vector<128xf32>
    %8 = vector.shape_cast %7 : vector<128xf32> to vector<1x128xf32>
    %9 = arith.mulf %5, %5 : vector<512x128xf32>
    %cst_7 = arith.constant dense<0.000000e+00> : vector<128xf32>
    %10 = vector.multi_reduction <add>, %9, %cst_7 [0] : vector<512x128xf32> to vector<128xf32>
    %11 = vector.shape_cast %10 : vector<128xf32> to vector<1x128xf32>
    %12 = tpu.iota {dimensions = array<i32: 0>} : vector<8x128xi32>
    %c0_i32_8 = arith.constant 0 : i32
    %13 = vector.broadcast %c0_i32_8 : i32 to vector<8x128xi32>
    %14 = arith.cmpi eq, %12, %13 : vector<8x128xi32>
    %c0_9 = arith.constant 0 : index
    %c0_10 = arith.constant 0 : index
    %15 = vector.load %arg5[%c0_9, %c0_10] : memref<8x128xf32, #tpu.memory_space<vmem>>, vector<8x128xf32>
    %cst_11 = arith.constant 0.000000e+00 : f32
    %16 = vector.shape_cast %8 : vector<1x128xf32> to vector<1x128xf32>
    %17 = vector.broadcast %16 : vector<1x128xf32> to vector<8x128xf32>
    %18 = vector.broadcast %cst_11 : f32 to vector<8x128xf32>
    %19 = arith.select %14, %17, %18 : vector<8x128xi1>, vector<8x128xf32>
    %20 = arith.addf %15, %19 : vector<8x128xf32>
    %c0_12 = arith.constant 0 : index
    %c0_13 = arith.constant 0 : index
    %21 = vector.load %arg5[%c0_12, %c0_13] : memref<8x128xf32, #tpu.memory_space<vmem>>, vector<8x128xf32>
    tpu.vector_store %arg5[%c0_12, %c0_13], %20 {strides = array<i32>} : memref<8x128xf32, #tpu.memory_space<vmem>>, vector<8x128xf32>,
    %c0_14 = arith.constant 0 : index
    %c0_15 = arith.constant 0 : index
    %22 = vector.load %arg6[%c0_14, %c0_15] : memref<8x128xf32, #tpu.memory_space<vmem>>, vector<8x128xf32>
    %cst_16 = arith.constant 0.000000e+00 : f32
    %23 = vector.shape_cast %11 : vector<1x128xf32> to vector<1x128xf32>
    %24 = vector.broadcast %23 : vector<1x128xf32> to vector<8x128xf32>
    %25 = vector.broadcast %cst_16 : f32 to vector<8x128xf32>
    %26 = arith.select %14, %24, %25 : vector<8x128xi1>, vector<8x128xf32>
    %27 = arith.addf %22, %26 : vector<8x128xf32>
    %c0_17 = arith.constant 0 : index
    %c0_18 = arith.constant 0 : index
    %28 = vector.load %arg6[%c0_17, %c0_18] : memref<8x128xf32, #tpu.memory_space<vmem>>, vector<8x128xf32>
    tpu.vector_store %arg6[%c0_17, %c0_18], %27 {strides = array<i32>} : memref<8x128xf32, #tpu.memory_space<vmem>>, vector<8x128xf32>,
    return
  }
  func.func @transform_0(%arg0: i32, %arg1: i32) -> (i32, i32) {
    %c1_i32 = arith.constant 1 : i32
    %0 = arith.muli %arg0, %c1_i32 : i32
    %1 = arith.addi %0, %arg1 : i32
    %c0_i32 = arith.constant 0 : i32
    %c0_i32_0 = arith.constant 0 : i32
    return %1, %c0_i32 : i32, i32
  }
  func.func @transform_1(%arg0: i32, %arg1: i32) -> (i32, i32) {
    %c0_i32 = arith.constant 0 : i32
    %c0_i32_0 = arith.constant 0 : i32
    %c0_i32_1 = arith.constant 0 : i32
    return %c0_i32, %c0_i32_0 : i32, i32
  }
  func.func @transform_2(%arg0: i32, %arg1: i32) -> (i32, i32) {
    %c1_i32 = arith.constant 1 : i32
    %0 = arith.muli %arg0, %c1_i32 : i32
    %1 = arith.addi %0, %arg1 : i32
    %c0_i32 = arith.constant 0 : i32
    %c0_i32_0 = arith.constant 0 : i32
    return %1, %c0_i32 : i32, i32
  }
  func.func @transform_3(%arg0: i32, %arg1: i32) -> (i32, i32) {
    %c0_i32 = arith.constant 0 : i32
    %c0_i32_0 = arith.constant 0 : i32
    return %arg0, %c0_i32 : i32, i32
  }
  func.func @transform_4(%arg0: i32, %arg1: i32) -> (i32, i32) {
    %c0_i32 = arith.constant 0 : i32
    %c0_i32_0 = arith.constant 0 : i32
    return %arg0, %c0_i32 : i32, i32
  }
}

</mosaic_0001>

<bundles_post_ra>
// kernel: conv_bn_relu.3
= control target key start
LH: loop header
LB: loop body
LE: loop exit
PB: predicated region body
PF: predicated region fallthrough
CT: control target
= control target key end

     0   :  { %s914_s1 = inlined_call_operand.vmem [shape: f32[8,128], index: 1, kind: input, shape index: {}]   ;;  %s915_s2 = inlined_call_operand.vmem [shape: f32[8,128], index: 2, kind: input, shape index: {}]   ;;  %s916_s0 = inlined_call_operand.vmem [shape: f32[512,128], index: 0, kind: input, shape index: {}, may-alias: {0,3}]   ;;  %s917_s3 = inlined_call_operand.vmem [shape: f32[512,128], index: 3, kind: output, shape index: {}, may-alias: {0,3}]  }
   0x1   :  { %v14_v0 = vld [vmem:[%s914_s1] sm:$0xff]  ;;  %v45_v25 = vld [vmem:[%s916_s0 + $0x8] sm:$0xff]  ;;  %v46_v26 = vld [vmem:[%s916_s0 + $0x10] sm:$0xff] }
   0x2   :  { %v21_v1 = vld [vmem:[%s915_s2] sm:$0xff]  ;;  %v15_v2 = vrot.slane %v14_v0, 4  ;;  %v47_v27 = vld [vmem:[%s916_s0 + $0x18] sm:$0xff]  ;;  %v49_v29 = vld [vmem:[%s916_s0 + $0x28] sm:$0xff] }
   0x3   :  { %v22_v3 = vrot.slane %v21_v1, 4  ;;  %v44_v23 = vld [vmem:[%s916_s0] sm:$0xff]  ;;  %v50_v31 = vld [vmem:[%s916_s0 + $0x30] sm:$0xff]  ;;  %v51_v36 = vld [vmem:[%s916_s0 + $0x38] sm:$0xff] }
   0x4   :  { %v16_v4 = vadd.f32 %v15_v2, %v14_v0  ;;  %v48_v28 = vld [vmem:[%s916_s0 + $0x20] sm:$0xff]  ;;  %v53_v42 = vld [vmem:[%s916_s0 + $0x48] sm:$0xff]  ;;  %v54_v43 = vld [vmem:[%s916_s0 + $0x50] sm:$0xff] }
   0x5   :  { %v23_v5 = vadd.f32 %v22_v3, %v21_v1  ;;  %v52_v37 = vld [vmem:[%s916_s0 + $0x40] sm:$0xff]  ;;  %v55_v51 = vld [vmem:[%s916_s0 + $0x58] sm:$0xff]  ;;  %v57_v61 = vld [vmem:[%s916_s0 + $0x68] sm:$0xff] }
   0x6   :  { %v17_v6 = vrot.slane %v16_v4, 2  ;;  %v56_v56 = vld [vmem:[%s916_s0 + $0x60] sm:$0xff]  ;;  %v58_v1 = vld [vmem:[%s916_s0 + $0x70] sm:$0xff] }
   0x7   :  { %v24_v7 = vrot.slane %v23_v5, 2 }
   0x8   :  { %v18_v8 = vadd.f32 %v17_v6, %v16_v4 }
   0x9   :  { %v25_v9 = vadd.f32 %v24_v7, %v23_v5 }
   0xa   :  { %v19_v10 = vrot.slane %v18_v8, 1 }
   0xb   :  { %v26_v11 = vrot.slane %v25_v9, 1 }
   0xc   :  { %v20_v12 = vadd.f32 %v19_v10, %v18_v8 }
   0xd   :  { %v27_v13 = vadd.f32 %v26_v11, %v25_v9 }
   0xe   :  { %v396_v14 = vmul.f32 0.001953125, %v20_v12 }
   0xf   :  { %v29_v15 = vmul.f32 0.001953125, %v27_v13 }
  0x10   :  { %v30_v16 = vmul.f32 %v396_v14, %v396_v14  ;;  %v108_v32 = vsub.f32 %v44_v23, %v396_v14  ;;  %v109_v33 = vsub.f32 %v45_v25, %v396_v14  ;;  %v110_v34 = vsub.f32 %v46_v26, %v396_v14 }
  0x11   :  { %v111_v35 = vsub.f32 %v47_v27, %v396_v14  ;;  %v112_v39 = vsub.f32 %v48_v28, %v396_v14  ;;  %v113_v40 = vsub.f32 %v49_v29, %v396_v14  ;;  %v114_v41 = vsub.f32 %v50_v31, %v396_v14 }
  0x12   :  { %v31_v17 = vsub.f32 %v29_v15, %v30_v16  ;;  %v115_v45 = vsub.f32 %v51_v36, %v396_v14  ;;  %v116_v46 = vsub.f32 %v52_v37, %v396_v14  ;;  %v117_v54 = vsub.f32 %v53_v42, %v396_v14 }
  0x13   :  { %v118_v55 = vsub.f32 %v54_v43, %v396_v14  ;;  %v119_v0 = vsub.f32 %v55_v51, %v396_v14  ;;  %v120_v4 = vsub.f32 %v56_v56, %v396_v14  ;;  %v121_v8 = vsub.f32 %v57_v61, %v396_v14 }
  0x14   :  { %v32_v18 = vmax.f32 %v31_v17, 0.0  ;;  %v122_v12 = vsub.f32 %v58_v1, %v396_v14 }
  0x16   :  { %v33_v19 = vadd.f32 1e-05, %v32_v18 }
  0x18   :  { %368 = vrsqrt.f32 %v33_v19  ;;  %vm40_vm0 = vweird.f32 %v33_v19 }
  0x1e   :  { %v369_v20 = vpop.eup %368 }
  0x1f   :  { %v35_v21 = vmul.f32 %v369_v20, %v33_v19  ;;  %vm41_vm1 = vweird.f32 %v369_v20 }
  0x20   :  { %vm42_vm2 = vmor %vm40_vm0, %vm41_vm1 }
  0x21   :  { %v36_v22 = vmul.f32 %v369_v20, %v35_v21 }
  0x23   :  { %v37_v24 = vmul.f32 0.5, %v36_v22 }
  0x25   :  { %v38_v30 = vsub.f32 1.5, %v37_v24 }
  0x27   :  { %v39_v38 = vmul.f32 %v369_v20, %v38_v30 }
  0x29   :  { %v440_v44 = vsel %vm42_vm2, %v369_v20, %v39_v38 }
  0x2a   :  { %v172_v47 = vmul.f32 %v108_v32, %v440_v44  ;;  %v173_v48 = vmul.f32 %v109_v33, %v440_v44  ;;  %v174_v49 = vmul.f32 %v110_v34, %v440_v44  ;;  %v175_v50 = vmul.f32 %v111_v35, %v440_v44 }
  0x2b   :  { %v176_v52 = vmul.f32 %v112_v39, %v440_v44  ;;  %v177_v53 = vmul.f32 %v113_v40, %v440_v44  ;;  %v178_v60 = vmul.f32 %v114_v41, %v440_v44  ;;  %v179_v63 = vmul.f32 %v115_v45, %v440_v44 }
  0x2c   :  { %v236_v57 = vmax.f32 %v172_v47, 0.0  ;;  %v237_v58 = vmax.f32 %v173_v48, 0.0  ;;  %v238_v59 = vmax.f32 %v174_v49, 0.0  ;;  %v239_v62 = vmax.f32 %v175_v50, 0.0 }
  0x2d   :  { %v240_v2 = vmax.f32 %v176_v52, 0.0  ;;  %v180_v3 = vmul.f32 %v116_v46, %v440_v44  ;;  %v241_v6 = vmax.f32 %v177_v53, 0.0  ;;  %v181_v7 = vmul.f32 %v117_v54, %v440_v44 }
  0x2e   :  { %300 = vst [vmem:[%s917_s3] sm:$0xff] %v236_v57  ;;  %v242_v10 = vmax.f32 %v178_v60, 0.0  ;;  %v182_v11 = vmul.f32 %v118_v55, %v440_v44  ;;  %v243_v15 = vmax.f32 %v179_v63, 0.0  ;;  %v183_v16 = vmul.f32 %v119_v0, %v440_v44 }
  0x2f   :  { %v244_v19 = vmax.f32 %v180_v3, 0.0  ;;  %v184_v20 = vmul.f32 %v120_v4, %v440_v44  ;;  %v245_v23 = vmax.f32 %v181_v7, 0.0  ;;  %v185_v24 = vmul.f32 %v121_v8, %v440_v44 }
  0x30   :  { %v246_v27 = vmax.f32 %v182_v11, 0.0  ;;  %v186_v28 = vmul.f32 %v122_v12, %v440_v44  ;;  %v247_v31 = vmax.f32 %v183_v16, 0.0 }
  0x31   :  { %v248_v35 = vmax.f32 %v184_v20, 0.0  ;;  %v249_v39 = vmax.f32 %v185_v24, 0.0 }
  0x32   :  { %v250_v43 = vmax.f32 %v186_v28, 0.0 }
  0x35   :  { %v59_v5 = vld [vmem:[%s916_s0 + $0x78] sm:$0xff] }
  0x36   :  { %301 = vst [vmem:[%s917_s3 + $0x8] sm:$0xff] %v237_v58  ;;  %v123_v17 = vsub.f32 %v59_v5, %v396_v14 }
  0x38   :  { %v187_v32 = vmul.f32 %v123_v17, %v440_v44 }
  0x3a   :  { %v251_v48 = vmax.f32 %v187_v32, 0.0 }
  0x3d   :  { %v60_v9 = vld [vmem:[%s916_s0 + $0x80] sm:$0xff] }
  0x3e   :  { %302 = vst [vmem:[%s917_s3 + $0x10] sm:$0xff] %v238_v59  ;;  %v124_v21 = vsub.f32 %v60_v9, %v396_v14 }
  0x40   :  { %v188_v36 = vmul.f32 %v124_v21, %v440_v44 }
  0x42   :  { %v252_v52 = vmax.f32 %v188_v36, 0.0 }
  0x45   :  { %v61_v13 = vld [vmem:[%s916_s0 + $0x88] sm:$0xff] }
  0x46   :  { %303 = vst [vmem:[%s917_s3 + $0x18] sm:$0xff] %v239_v62  ;;  %v125_v25 = vsub.f32 %v61_v13, %v396_v14 }
  0x48   :  { %v189_v40 = vmul.f32 %v125_v25, %v440_v44 }
  0x4a   :  { %v253_v56 = vmax.f32 %v189_v40, 0.0 }
  0x4d   :  { %v62_v18 = vld [vmem:[%s916_s0 + $0x90] sm:$0xff] }
  0x4e   :  { %304 = vst [vmem:[%s917_s3 + $0x20] sm:$0xff] %v240_v2  ;;  %v126_v29 = vsub.f32 %v62_v18, %v396_v14 }
  0x50   :  { %v190_v45 = vmul.f32 %v126_v29, %v440_v44 }
  0x52   :  { %v254_v60 = vmax.f32 %v190_v45, 0.0 }
  0x55   :  { %v63_v22 = vld [vmem:[%s916_s0 + $0x98] sm:$0xff] }
  0x56   :  { %305 = vst [vmem:[%s917_s3 + $0x28] sm:$0xff] %v241_v6  ;;  %v127_v33 = vsub.f32 %v63_v22, %v396_v14 }
  0x58   :  { %v191_v49 = vmul.f32 %v127_v33, %v440_v44 }
  0x5a   :  { %v255_v0 = vmax.f32 %v191_v49, 0.0 }
  0x5d   :  { %v64_v26 = vld [vmem:[%s916_s0 + $0xa0] sm:$0xff] }
  0x5e   :  { %306 = vst [vmem:[%s917_s3 + $0x30] sm:$0xff] %v242_v10  ;;  %v128_v37 = vsub.f32 %v64_v26, %v396_v14 }
  0x60   :  { %v192_v53 = vmul.f32 %v128_v37, %v440_v44 }
  0x62   :  { %v256_v4 = vmax.f32 %v192_v53, 0.0 }
  0x65   :  { %v65_v30 = vld [vmem:[%s916_s0 + $0xa8] sm:$0xff] }
  0x66   :  { %307 = vst [vmem:[%s917_s3 + $0x38] sm:$0xff] %v243_v15  ;;  %v129_v41 = vsub.f32 %v65_v30, %v396_v14 }
  0x68   :  { %v193_v57 = vmul.f32 %v129_v41, %v440_v44 }
  0x6a   :  { %v257_v8 = vmax.f32 %v193_v57, 0.0 }
  0x6d   :  { %v66_v34 = vld [vmem:[%s916_s0 + $0xb0] sm:$0xff] }
  0x6e   :  { %308 = vst [vmem:[%s917_s3 + $0x40] sm:$0xff] %v244_v19  ;;  %v130_v46 = vsub.f32 %v66_v34, %v396_v14 }
  0x70   :  { %v194_v61 = vmul.f32 %v130_v46, %v440_v44 }
  0x72   :  { %v258_v12 = vmax.f32 %v194_v61, 0.0 }
  0x75   :  { %v67_v38 = vld [vmem:[%s916_s0 + $0xb8] sm:$0xff] }
  0x76   :  { %309 = vst [vmem:[%s917_s3 + $0x48] sm:$0xff] %v245_v23  ;;  %v131_v50 = vsub.f32 %v67_v38, %v396_v14 }
  0x78   :  { %v195_v1 = vmul.f32 %v131_v50, %v440_v44 }
  0x7a   :  { %v259_v17 = vmax.f32 %v195_v1, 0.0 }
  0x7d   :  { %v68_v42 = vld [vmem:[%s916_s0 + $0xc0] sm:$0xff] }
  0x7e   :  { %310 = vst [vmem:[%s917_s3 + $0x50] sm:$0xff] %v246_v27  ;;  %v132_v54 = vsub.f32 %v68_v42, %v396_v14 }
  0x80   :  { %v196_v5 = vmul.f32 %v132_v54, %v440_v44 }
  0x82   :  { %v260_v21 = vmax.f32 %v196_v5, 0.0 }
  0x85   :  { %v69_v47 = vld [vmem:[%s916_s0 + $0xc8] sm:$0xff] }
  0x86   :  { %311 = vst [vmem:[%s917_s3 + $0x58] sm:$0xff] %v247_v31  ;;  %v133_v58 = vsub.f32 %v69_v47, %v396_v14 }
  0x88   :  { %v197_v9 = vmul.f32 %v133_v58, %v440_v44 }
  0x8a   :  { %v261_v25 = vmax.f32 %v197_v9, 0.0 }
  0x8d   :  { %v70_v51 = vld [vmem:[%s916_s0 + $0xd0] sm:$0xff] }
  0x8e   :  { %312 = vst [vmem:[%s917_s3 + $0x60] sm:$0xff] %v248_v35  ;;  %v134_v62 = vsub.f32 %v70_v51, %v396_v14 }
  0x90   :  { %v198_v13 = vmul.f32 %v134_v62, %v440_v44 }
  0x92   :  { %v262_v29 = vmax.f32 %v198_v13, 0.0 }
  0x95   :  { %v71_v55 = vld [vmem:[%s916_s0 + $0xd8] sm:$0xff] }
  0x96   :  { %313 = vst [vmem:[%s917_s3 + $0x68] sm:$0xff] %v249_v39  ;;  %v135_v2 = vsub.f32 %v71_v55, %v396_v14 }
  0x98   :  { %v199_v18 = vmul.f32 %v135_v2, %v440_v44 }
  0x9a   :  { %v263_v33 = vmax.f32 %v199_v18, 0.0 }
  0x9d   :  { %v72_v59 = vld [vmem:[%s916_s0 + $0xe0] sm:$0xff] }
  0x9e   :  { %314 = vst [vmem:[%s917_s3 + $0x70] sm:$0xff] %v250_v43  ;;  %v136_v6 = vsub.f32 %v72_v59, %v396_v14 }
  0xa0   :  { %v200_v22 = vmul.f32 %v136_v6, %v440_v44 }
  0xa2   :  { %v264_v37 = vmax.f32 %v200_v22, 0.0 }
  0xa5   :  { %v73_v63 = vld [vmem:[%s916_s0 + $0xe8] sm:$0xff] }
  0xa6   :  { %315 = vst [vmem:[%s917_s3 + $0x78] sm:$0xff] %v251_v48  ;;  %v137_v10 = vsub.f32 %v73_v63, %v396_v14 }
  0xa8   :  { %v201_v26 = vmul.f32 %v137_v10, %v440_v44 }
  0xaa   :  { %v265_v41 = vmax.f32 %v201_v26, 0.0 }
  0xad   :  { %v74_v3 = vld [vmem:[%s916_s0 + $0xf0] sm:$0xff] }
  0xae   :  { %316 = vst [vmem:[%s917_s3 + $0x80] sm:$0xff] %v252_v52  ;;  %v138_v15 = vsub.f32 %v74_v3, %v396_v14 }
  0xb0   :  { %v202_v30 = vmul.f32 %v138_v15, %v440_v44 }
  0xb2   :  { %v266_v46 = vmax.f32 %v202_v30, 0.0 }
  0xb5   :  { %v75_v7 = vld [vmem:[%s916_s0 + $0xf8] sm:$0xff] }
  0xb6   :  { %317 = vst [vmem:[%s917_s3 + $0x88] sm:$0xff] %v253_v56  ;;  %v139_v19 = vsub.f32 %v75_v7, %v396_v14 }
  0xb8   :  { %v203_v34 = vmul.f32 %v139_v19, %v440_v44 }
  0xba   :  { %v267_v50 = vmax.f32 %v203_v34, 0.0 }
  0xbd   :  { %v76_v11 = vld [vmem:[%s916_s0 + $0x100] sm:$0xff] }
  0xbe   :  { %318 = vst [vmem:[%s917_s3 + $0x90] sm:$0xff] %v254_v60  ;;  %v140_v23 = vsub.f32 %v76_v11, %v396_v14 }
  0xc0   :  { %v204_v38 = vmul.f32 %v140_v23, %v440_v44 }
  0xc2   :  { %v268_v54 = vmax.f32 %v204_v38, 0.0 }
  0xc5   :  { %v77_v16 = vld [vmem:[%s916_s0 + $0x108] sm:$0xff] }
  0xc6   :  { %319 = vst [vmem:[%s917_s3 + $0x98] sm:$0xff] %v255_v0  ;;  %v141_v27 = vsub.f32 %v77_v16, %v396_v14 }
  0xc8   :  { %v205_v42 = vmul.f32 %v141_v27, %v440_v44 }
  0xca   :  { %v269_v58 = vmax.f32 %v205_v42, 0.0 }
  0xcd   :  { %v78_v20 = vld [vmem:[%s916_s0 + $0x110] sm:$0xff] }
  0xce   :  { %320 = vst [vmem:[%s917_s3 + $0xa0] sm:$0xff] %v256_v4  ;;  %v142_v31 = vsub.f32 %v78_v20, %v396_v14 }
  0xd0   :  { %v206_v47 = vmul.f32 %v142_v31, %v440_v44 }
  0xd2   :  { %v270_v62 = vmax.f32 %v206_v47, 0.0 }
  0xd5   :  { %v79_v24 = vld [vmem:[%s916_s0 + $0x118] sm:$0xff] }
  0xd6   :  { %321 = vst [vmem:[%s917_s3 + $0xa8] sm:$0xff] %v257_v8  ;;  %v143_v35 = vsub.f32 %v79_v24, %v396_v14 }
  0xd8   :  { %v207_v51 = vmul.f32 %v143_v35, %v440_v44 }
  0xda   :  { %v271_v2 = vmax.f32 %v207_v51, 0.0 }
  0xdd   :  { %v80_v28 = vld [vmem:[%s916_s0 + $0x120] sm:$0xff] }
  0xde   :  { %322 = vst [vmem:[%s917_s3 + $0xb0] sm:$0xff] %v258_v12  ;;  %v144_v39 = vsub.f32 %v80_v28, %v396_v14 }
  0xe0   :  { %v208_v55 = vmul.f32 %v144_v39, %v440_v44 }
  0xe2   :  { %v272_v6 = vmax.f32 %v208_v55, 0.0 }
  0xe5   :  { %v81_v32 = vld [vmem:[%s916_s0 + $0x128] sm:$0xff] }
  0xe6   :  { %323 = vst [vmem:[%s917_s3 + $0xb8] sm:$0xff] %v259_v17  ;;  %v145_v43 = vsub.f32 %v81_v32, %v396_v14 }
  0xe8   :  { %v209_v59 = vmul.f32 %v145_v43, %v440_v44 }
  0xea   :  { %v273_v10 = vmax.f32 %v209_v59, 0.0 }
  0xed   :  { %v82_v36 = vld [vmem:[%s916_s0 + $0x130] sm:$0xff] }
  0xee   :  { %324 = vst [vmem:[%s917_s3 + $0xc0] sm:$0xff] %v260_v21  ;;  %v146_v48 = vsub.f32 %v82_v36, %v396_v14 }
  0xf0   :  { %v210_v63 = vmul.f32 %v146_v48, %v440_v44 }
  0xf2   :  { %v274_v15 = vmax.f32 %v210_v63, 0.0 }
  0xf5   :  { %v83_v40 = vld [vmem:[%s916_s0 + $0x138] sm:$0xff] }
  0xf6   :  { %325 = vst [vmem:[%s917_s3 + $0xc8] sm:$0xff] %v261_v25  ;;  %v147_v52 = vsub.f32 %v83_v40, %v396_v14 }
  0xf8   :  { %v211_v3 = vmul.f32 %v147_v52, %v440_v44 }
  0xfa   :  { %v275_v19 = vmax.f32 %v211_v3, 0.0 }
  0xfd   :  { %v84_v45 = vld [vmem:[%s916_s0 + $0x140] sm:$0xff] }
  0xfe   :  { %326 = vst [vmem:[%s917_s3 + $0xd0] sm:$0xff] %v262_v29  ;;  %v148_v56 = vsub.f32 %v84_v45, %v396_v14 }
 0x100   :  { %v212_v7 = vmul.f32 %v148_v56, %v440_v44 }
 0x102   :  { %v276_v23 = vmax.f32 %v212_v7, 0.0 }
 0x105   :  { %v85_v49 = vld [vmem:[%s916_s0 + $0x148] sm:$0xff] }
 0x106   :  { %327 = vst [vmem:[%s917_s3 + $0xd8] sm:$0xff] %v263_v33  ;;  %v149_v60 = vsub.f32 %v85_v49, %v396_v14 }
 0x108   :  { %v213_v11 = vmul.f32 %v149_v60, %v440_v44 }
 0x10a   :  { %v277_v27 = vmax.f32 %v213_v11, 0.0 }
 0x10d   :  { %v86_v53 = vld [vmem:[%s916_s0 + $0x150] sm:$0xff] }
 0x10e   :  { %328 = vst [vmem:[%s917_s3 + $0xe0] sm:$0xff] %v264_v37  ;;  %v150_v0 = vsub.f32 %v86_v53, %v396_v14 }
 0x110   :  { %v214_v16 = vmul.f32 %v150_v0, %v440_v44 }
 0x112   :  { %v278_v31 = vmax.f32 %v214_v16, 0.0 }
 0x115   :  { %v87_v57 = vld [vmem:[%s916_s0 + $0x158] sm:$0xff] }
 0x116   :  { %329 = vst [vmem:[%s917_s3 + $0xe8] sm:$0xff] %v265_v41  ;;  %v151_v4 = vsub.f32 %v87_v57, %v396_v14 }
 0x118   :  { %v215_v20 = vmul.f32 %v151_v4, %v440_v44 }
 0x11a   :  { %v279_v35 = vmax.f32 %v215_v20, 0.0 }
 0x11d   :  { %v88_v61 = vld [vmem:[%s916_s0 + $0x160] sm:$0xff] }
 0x11e   :  { %330 = vst [vmem:[%s917_s3 + $0xf0] sm:$0xff] %v266_v46  ;;  %v152_v8 = vsub.f32 %v88_v61, %v396_v14 }
 0x120   :  { %v216_v24 = vmul.f32 %v152_v8, %v440_v44 }
 0x122   :  { %v280_v39 = vmax.f32 %v216_v24, 0.0 }
 0x125   :  { %v89_v1 = vld [vmem:[%s916_s0 + $0x168] sm:$0xff] }
 0x126   :  { %331 = vst [vmem:[%s917_s3 + $0xf8] sm:$0xff] %v267_v50  ;;  %v153_v12 = vsub.f32 %v89_v1, %v396_v14 }
 0x128   :  { %v217_v28 = vmul.f32 %v153_v12, %v440_v44 }
 0x12a   :  { %v281_v43 = vmax.f32 %v217_v28, 0.0 }
 0x12d   :  { %v90_v5 = vld [vmem:[%s916_s0 + $0x170] sm:$0xff] }
 0x12e   :  { %332 = vst [vmem:[%s917_s3 + $0x100] sm:$0xff] %v268_v54  ;;  %v154_v17 = vsub.f32 %v90_v5, %v396_v14 }
 0x130   :  { %v218_v32 = vmul.f32 %v154_v17, %v440_v44 }
 0x132   :  { %v282_v48 = vmax.f32 %v218_v32, 0.0 }
 0x135   :  { %v91_v9 = vld [vmem:[%s916_s0 + $0x178] sm:$0xff] }
 0x136   :  { %333 = vst [vmem:[%s917_s3 + $0x108] sm:$0xff] %v269_v58  ;;  %v155_v21 = vsub.f32 %v91_v9, %v396_v14 }
 0x138   :  { %v219_v36 = vmul.f32 %v155_v21, %v440_v44 }
 0x13a   :  { %v283_v52 = vmax.f32 %v219_v36, 0.0 }
 0x13d   :  { %v92_v13 = vld [vmem:[%s916_s0 + $0x180] sm:$0xff] }
 0x13e   :  { %334 = vst [vmem:[%s917_s3 + $0x110] sm:$0xff] %v270_v62  ;;  %v156_v25 = vsub.f32 %v92_v13, %v396_v14 }
 0x140   :  { %v220_v40 = vmul.f32 %v156_v25, %v440_v44 }
 0x142   :  { %v284_v56 = vmax.f32 %v220_v40, 0.0 }
 0x145   :  { %v93_v18 = vld [vmem:[%s916_s0 + $0x188] sm:$0xff] }
 0x146   :  { %335 = vst [vmem:[%s917_s3 + $0x118] sm:$0xff] %v271_v2  ;;  %v157_v29 = vsub.f32 %v93_v18, %v396_v14 }
 0x148   :  { %v221_v45 = vmul.f32 %v157_v29, %v440_v44 }
 0x14a   :  { %v285_v60 = vmax.f32 %v221_v45, 0.0 }
 0x14d   :  { %v94_v22 = vld [vmem:[%s916_s0 + $0x190] sm:$0xff] }
 0x14e   :  { %336 = vst [vmem:[%s917_s3 + $0x120] sm:$0xff] %v272_v6  ;;  %v158_v33 = vsub.f32 %v94_v22, %v396_v14 }
 0x150   :  { %v222_v49 = vmul.f32 %v158_v33, %v440_v44 }
 0x152   :  { %v286_v0 = vmax.f32 %v222_v49, 0.0 }
 0x155   :  { %v95_v26 = vld [vmem:[%s916_s0 + $0x198] sm:$0xff] }
 0x156   :  { %337 = vst [vmem:[%s917_s3 + $0x128] sm:$0xff] %v273_v10  ;;  %v159_v37 = vsub.f32 %v95_v26, %v396_v14 }
 0x158   :  { %v223_v53 = vmul.f32 %v159_v37, %v440_v44 }
 0x15a   :  { %v287_v4 = vmax.f32 %v223_v53, 0.0 }
 0x15d   :  { %v96_v30 = vld [vmem:[%s916_s0 + $0x1a0] sm:$0xff] }
 0x15e   :  { %338 = vst [vmem:[%s917_s3 + $0x130] sm:$0xff] %v274_v15  ;;  %v160_v41 = vsub.f32 %v96_v30, %v396_v14 }
 0x160   :  { %v224_v57 = vmul.f32 %v160_v41, %v440_v44 }
 0x162   :  { %v288_v8 = vmax.f32 %v224_v57, 0.0 }
 0x165   :  { %v97_v34 = vld [vmem:[%s916_s0 + $0x1a8] sm:$0xff] }
 0x166   :  { %339 = vst [vmem:[%s917_s3 + $0x138] sm:$0xff] %v275_v19  ;;  %v161_v46 = vsub.f32 %v97_v34, %v396_v14 }
 0x168   :  { %v225_v61 = vmul.f32 %v161_v46, %v440_v44 }
 0x16a   :  { %v289_v12 = vmax.f32 %v225_v61, 0.0 }
 0x16d   :  { %v98_v38 = vld [vmem:[%s916_s0 + $0x1b0] sm:$0xff] }
 0x16e   :  { %340 = vst [vmem:[%s917_s3 + $0x140] sm:$0xff] %v276_v23  ;;  %v162_v50 = vsub.f32 %v98_v38, %v396_v14 }
 0x170   :  { %v226_v1 = vmul.f32 %v162_v50, %v440_v44 }
 0x172   :  { %v290_v16 = vmax.f32 %v226_v1, 0.0 }
 0x175   :  { %v99_v42 = vld [vmem:[%s916_s0 + $0x1b8] sm:$0xff] }
 0x176   :  { %341 = vst [vmem:[%s917_s3 + $0x148] sm:$0xff] %v277_v27  ;;  %v163_v54 = vsub.f32 %v99_v42, %v396_v14 }
 0x178   :  { %v227_v5 = vmul.f32 %v163_v54, %v440_v44 }
 0x17a   :  { %v291_v19 = vmax.f32 %v227_v5, 0.0 }
 0x17d   :  { %v100_v47 = vld [vmem:[%s916_s0 + $0x1c0] sm:$0xff] }
 0x17e   :  { %342 = vst [vmem:[%s917_s3 + $0x150] sm:$0xff] %v278_v31  ;;  %v164_v58 = vsub.f32 %v100_v47, %v396_v14 }
 0x180   :  { %v228_v9 = vmul.f32 %v164_v58, %v440_v44 }
 0x182   :  { %v292_v22 = vmax.f32 %v228_v9, 0.0 }
 0x185   :  { %v101_v51 = vld [vmem:[%s916_s0 + $0x1c8] sm:$0xff] }
 0x186   :  { %343 = vst [vmem:[%s917_s3 + $0x158] sm:$0xff] %v279_v35  ;;  %v165_v62 = vsub.f32 %v101_v51, %v396_v14 }
 0x188   :  { %v229_v13 = vmul.f32 %v165_v62, %v440_v44 }
 0x18a   :  { %v293_v24 = vmax.f32 %v229_v13, 0.0 }
 0x18d   :  { %v102_v55 = vld [vmem:[%s916_s0 + $0x1d0] sm:$0xff] }
 0x18e   :  { %344 = vst [vmem:[%s917_s3 + $0x160] sm:$0xff] %v280_v39  ;;  %v166_v2 = vsub.f32 %v102_v55, %v396_v14 }
 0x190   :  { %v230_v17 = vmul.f32 %v166_v2, %v440_v44 }
 0x192   :  { %v294_v26 = vmax.f32 %v230_v17, 0.0 }
 0x195   :  { %v103_v59 = vld [vmem:[%s916_s0 + $0x1d8] sm:$0xff] }
 0x196   :  { %345 = vst [vmem:[%s917_s3 + $0x168] sm:$0xff] %v281_v43  ;;  %v167_v6 = vsub.f32 %v103_v59, %v396_v14 }
 0x198   :  { %v231_v20 = vmul.f32 %v167_v6, %v440_v44 }
 0x19a   :  { %v295_v27 = vmax.f32 %v231_v20, 0.0 }
 0x19d   :  { %v104_v63 = vld [vmem:[%s916_s0 + $0x1e0] sm:$0xff] }
 0x19e   :  { %346 = vst [vmem:[%s917_s3 + $0x170] sm:$0xff] %v282_v48  ;;  %v168_v10 = vsub.f32 %v104_v63, %v396_v14 }
 0x1a0   :  { %v232_v23 = vmul.f32 %v168_v10, %v440_v44 }
 0x1a2   :  { %v296_v29 = vmax.f32 %v232_v23, 0.0 }
 0x1a5   :  { %v105_v3 = vld [vmem:[%s916_s0 + $0x1e8] sm:$0xff] }
 0x1a6   :  { %347 = vst [vmem:[%s917_s3 + $0x178] sm:$0xff] %v283_v52  ;;  %v169_v15 = vsub.f32 %v105_v3, %v396_v14 }
 0x1a8   :  { %v233_v25 = vmul.f32 %v169_v15, %v440_v44 }
 0x1aa   :  { %v297_v30 = vmax.f32 %v233_v25, 0.0 }
 0x1ad   :  { %v106_v7 = vld [vmem:[%s916_s0 + $0x1f0] sm:$0xff] }
 0x1ae   :  { %348 = vst [vmem:[%s917_s3 + $0x180] sm:$0xff] %v284_v56  ;;  %v170_v18 = vsub.f32 %v106_v7, %v396_v14 }
 0x1b5   :  { %v107_v11 = vld [vmem:[%s916_s0 + $0x1f8] sm:$0xff] }
 0x1b6   :  { %349 = vst [vmem:[%s917_s3 + $0x188] sm:$0xff] %v285_v60  ;;  %v171_v21 = vsub.f32 %v107_v11, %v396_v14  ;;  %v234_v14 = vmul.f32 %v170_v18, %v440_v44 }
 0x1b7   :  { %350 = vst [vmem:[%s917_s3 + $0x190] sm:$0xff] %v286_v0 }
 0x1b8   :  { %351 = vst [vmem:[%s917_s3 + $0x198] sm:$0xff] %v287_v4  ;;  %v235_v28 = vmul.f32 %v171_v21, %v440_v44  ;;  %v298_v31 = vmax.f32 %v234_v14, 0.0 }
 0x1b9   :  { %352 = vst [vmem:[%s917_s3 + $0x1a0] sm:$0xff] %v288_v8 }
 0x1ba   :  { %353 = vst [vmem:[%s917_s3 + $0x1a8] sm:$0xff] %v289_v12  ;;  %v299_v44 = vmax.f32 %v235_v28, 0.0 }
 0x1bb   :  { %354 = vst [vmem:[%s917_s3 + $0x1b0] sm:$0xff] %v290_v16 }
 0x1bc   :  { %355 = vst [vmem:[%s917_s3 + $0x1b8] sm:$0xff] %v291_v19 }
 0x1bd   :  { %356 = vst [vmem:[%s917_s3 + $0x1c0] sm:$0xff] %v292_v22 }
 0x1be   :  { %357 = vst [vmem:[%s917_s3 + $0x1c8] sm:$0xff] %v293_v24 }
 0x1bf   :  { %358 = vst [vmem:[%s917_s3 + $0x1d0] sm:$0xff] %v294_v26 }
 0x1c0   :  { %359 = vst [vmem:[%s917_s3 + $0x1d8] sm:$0xff] %v295_v27 }
 0x1c1   :  { %360 = vst [vmem:[%s917_s3 + $0x1e0] sm:$0xff] %v296_v29 }
 0x1c2   :  { %361 = vst [vmem:[%s917_s3 + $0x1e8] sm:$0xff] %v297_v30 }
 0x1c3   :  { %362 = vst [vmem:[%s917_s3 + $0x1f0] sm:$0xff] %v298_v31 }
 0x1c4   :  { %363 = vst [vmem:[%s917_s3 + $0x1f8] sm:$0xff] %v299_v44 }

// kernel: conv_bn_relu.2
= control target key start
LH: loop header
LB: loop body
LE: loop exit
PB: predicated region body
PF: predicated region fallthrough
CT: control target
= control target key end

     0   :  { %vm314_vm0 = vcmask 1043456   ;;  %vm121_vm1 = vcmask 31744   ;;  %s1677_s1 = inlined_call_operand.vmem [shape: f32[4,128], index: 1, kind: input, shape index: {}]   ;;  %s1678_s0 = inlined_call_operand.vmem [shape: f32[512,4], index: 0, kind: input, shape index: {}]   ;;  %s1679_s2 = inlined_call_operand.vmem [shape: f32[512,128], index: 2, kind: output, shape index: {0}]   ;;  %s1680_s3 = inlined_call_operand.vmem [shape: f32[8,128], index: 3, kind: output, shape index: {1}]   ;;  %s1681_s4 = inlined_call_operand.vmem [shape: f32[8,128], index: 4, kind: output, shape index: {2}]  }
   0x1   :  { %v120_v0 = vld [vmem:[%s1677_s1] sm:$0xf]  ;;  %v57_v3 = vld [vmem:[%s1678_s0 + $0x8] sm:$0xff]  ;;  %v58_v5 = vld [vmem:[%s1678_s0 + $0x10] sm:$0xff] }
   0x2   :  { %v56_v1 = vld [vmem:[%s1678_s0] sm:$0xff]  ;;  %844 = vmatpush.msk.msra.mxu0 %vm314_vm0, %v120_v0  ;;  %909 = vmatpush.msk.msra.mxu1 %vm314_vm0, %v120_v0  ;;  %v73_v4 = vld [vmem:[%s1678_s0 + $0x88] sm:$0xff]  ;;  %v74_v6 = vld [vmem:[%s1678_s0 + $0x90] sm:$0xff] }
   0x3   :  { %845 = vmatmul.msk.f32.vlgmr.msra.gmra.mxu0 %vm121_vm1, %v56_v1  ;;  %v72_v2 = vld [vmem:[%s1678_s0 + $0x80] sm:$0xff]  ;;  %910 = vmatpush.msk.msra.mxu2 %vm314_vm0, %v120_v0  ;;  %v59_v7 = vld [vmem:[%s1678_s0 + $0x18] sm:$0xff]  ;;  %v89_v12 = vld [vmem:[%s1678_s0 + $0x108] sm:$0xff] }
   0x4   :  { %861 = vmatmul.msk.f32.vlgmr.msra.gmra.mxu1 %vm121_vm1, %v72_v2  ;;  %911 = vmatpush.msk.msra.mxu3 %vm314_vm0, %v120_v0  ;;  %v75_v8 = vld [vmem:[%s1678_s0 + $0x98] sm:$0xff]  ;;  %v88_v9 = vld [vmem:[%s1678_s0 + $0x100] sm:$0xff]  ;;  %v61_v13 = vld [vmem:[%s1678_s0 + $0x28] sm:$0xff] }
   0x5   :  { %877 = vmatmul.msk.f32.vlgmr.msra.gmra.mxu2 %vm121_vm1, %v88_v9  ;;  %v60_v10 = vld [vmem:[%s1678_s0 + $0x20] sm:$0xff]  ;;  %v77_v14 = vld [vmem:[%s1678_s0 + $0xa8] sm:$0xff]  ;;  %v90_v15 = vld [vmem:[%s1678_s0 + $0x110] sm:$0xff] }
   0x6   :  { %v76_v11 = vld [vmem:[%s1678_s0 + $0xa0] sm:$0xff]  ;;  %v62_v16 = vld [vmem:[%s1678_s0 + $0x30] sm:$0xff]  ;;  %v91_v18 = vld [vmem:[%s1678_s0 + $0x118] sm:$0xff] }
   0x7   :  { %v78_v17 = vld [vmem:[%s1678_s0 + $0xb0] sm:$0xff]  ;;  %v63_v19 = vld [vmem:[%s1678_s0 + $0x38] sm:$0xff]  ;;  %v92_v21 = vld [vmem:[%s1678_s0 + $0x120] sm:$0xff] }
   0x8   :  { %v79_v20 = vld [vmem:[%s1678_s0 + $0xb8] sm:$0xff]  ;;  %v104_v22 = vld [vmem:[%s1678_s0 + $0x180] sm:$0xff]  ;;  %v93_v25 = vld [vmem:[%s1678_s0 + $0x128] sm:$0xff] }
   0x9   :  { %893 = vmatmul.msk.f32.vlgmr.msra.gmra.mxu3 %vm121_vm1, %v104_v22  ;;  %v64_v23 = vld [vmem:[%s1678_s0 + $0x40] sm:$0xff]  ;;  %v105_v26 = vld [vmem:[%s1678_s0 + $0x188] sm:$0xff]  ;;  %v94_v29 = vld [vmem:[%s1678_s0 + $0x130] sm:$0xff] }
   0xa   :  { %v80_v24 = vld [vmem:[%s1678_s0 + $0xc0] sm:$0xff]  ;;  %v65_v27 = vld [vmem:[%s1678_s0 + $0x48] sm:$0xff]  ;;  %v106_v30 = vld [vmem:[%s1678_s0 + $0x190] sm:$0xff] }
   0xb   :  { %846 = vmatmul.msk.f32.gmra.mxu0 %vm121_vm1, %v57_v3  ;;  %v81_v28 = vld [vmem:[%s1678_s0 + $0xc8] sm:$0xff]  ;;  %v66_v31 = vld [vmem:[%s1678_s0 + $0x50] sm:$0xff]  ;;  %v95_v33 = vld [vmem:[%s1678_s0 + $0x138] sm:$0xff] }
   0xc   :  { %862 = vmatmul.msk.f32.gmra.mxu1 %vm121_vm1, %v73_v4  ;;  %v82_v32 = vld [vmem:[%s1678_s0 + $0xd0] sm:$0xff]  ;;  %v107_v34 = vld [vmem:[%s1678_s0 + $0x198] sm:$0xff]  ;;  %v96_v37 = vld [vmem:[%s1678_s0 + $0x140] sm:$0xff] }
   0xd   :  { %878 = vmatmul.msk.f32.gmra.mxu2 %vm121_vm1, %v89_v12  ;;  %v67_v35 = vld [vmem:[%s1678_s0 + $0x58] sm:$0xff]  ;;  %v108_v38 = vld [vmem:[%s1678_s0 + $0x1a0] sm:$0xff]  ;;  %v97_v41 = vld [vmem:[%s1678_s0 + $0x148] sm:$0xff] }
   0xe   :  { %v83_v36 = vld [vmem:[%s1678_s0 + $0xd8] sm:$0xff]  ;;  %v68_v39 = vld [vmem:[%s1678_s0 + $0x60] sm:$0xff]  ;;  %v109_v42 = vld [vmem:[%s1678_s0 + $0x1a8] sm:$0xff] }
   0xf   :  { %v84_v40 = vld [vmem:[%s1678_s0 + $0xe0] sm:$0xff]  ;;  %v69_v43 = vld [vmem:[%s1678_s0 + $0x68] sm:$0xff]  ;;  %v98_v45 = vld [vmem:[%s1678_s0 + $0x150] sm:$0xff] }
  0x10   :  { %v85_v44 = vld [vmem:[%s1678_s0 + $0xe8] sm:$0xff]  ;;  %v110_v46 = vld [vmem:[%s1678_s0 + $0x1b0] sm:$0xff]  ;;  %v99_v49 = vld [vmem:[%s1678_s0 + $0x158] sm:$0xff] }
  0x11   :  { %894 = vmatmul.msk.f32.gmra.mxu3 %vm121_vm1, %v105_v26  ;;  %v70_v47 = vld [vmem:[%s1678_s0 + $0x70] sm:$0xff]  ;;  %v111_v50 = vld [vmem:[%s1678_s0 + $0x1b8] sm:$0xff]  ;;  %v100_v53 = vld [vmem:[%s1678_s0 + $0x160] sm:$0xff] }
  0x12   :  { %v86_v48 = vld [vmem:[%s1678_s0 + $0xf0] sm:$0xff]  ;;  %v71_v51 = vld [vmem:[%s1678_s0 + $0x78] sm:$0xff]  ;;  %v112_v54 = vld [vmem:[%s1678_s0 + $0x1c0] sm:$0xff] }
  0x13   :  { %847 = vmatmul.msk.f32.gmra.mxu0 %vm121_vm1, %v58_v5  ;;  %v87_v52 = vld [vmem:[%s1678_s0 + $0xf8] sm:$0xff]  ;;  %v101_v57 = vld [vmem:[%s1678_s0 + $0x168] sm:$0xff]  ;;  %v102_v1 = vld [vmem:[%s1678_s0 + $0x170] sm:$0xff] }
  0x14   :  { %863 = vmatmul.msk.f32.gmra.mxu1 %vm121_vm1, %v74_v6  ;;  %v113_v58 = vld [vmem:[%s1678_s0 + $0x1c8] sm:$0xff]  ;;  %v114_v2 = vld [vmem:[%s1678_s0 + $0x1d0] sm:$0xff]  ;;  %v115_v9 = vld [vmem:[%s1678_s0 + $0x1d8] sm:$0xff] }
  0x15   :  { %879 = vmatmul.msk.f32.gmra.mxu2 %vm121_vm1, %v90_v15  ;;  %v116_v15 = vld [vmem:[%s1678_s0 + $0x1e0] sm:$0xff]  ;;  %v117_v22 = vld [vmem:[%s1678_s0 + $0x1e8] sm:$0xff]  ;;  %v118_v26 = vld [vmem:[%s1678_s0 + $0x1f0] sm:$0xff] }
  0x19   :  { %895 = vmatmul.msk.f32.gmra.mxu3 %vm121_vm1, %v106_v30  ;;  %v119_v30 = vld [vmem:[%s1678_s0 + $0x1f8] sm:$0xff] }
  0x1b   :  { %848 = vmatmul.msk.f32.gmra.mxu0 %vm121_vm1, %v59_v7 }
  0x1c   :  { %864 = vmatmul.msk.f32.gmra.mxu1 %vm121_vm1, %v75_v8  ;;  %v103_v8 = vld [vmem:[%s1678_s0 + $0x178] sm:$0xff] }
  0x1d   :  { %880 = vmatmul.msk.f32.gmra.mxu2 %vm121_vm1, %v91_v18 }
  0x21   :  { %896 = vmatmul.msk.f32.gmra.mxu3 %vm121_vm1, %v107_v34 }
  0x23   :  { %849 = vmatmul.msk.f32.gmra.mxu0 %vm121_vm1, %v60_v10 }
  0x24   :  { %865 = vmatmul.msk.f32.gmra.mxu1 %vm121_vm1, %v76_v11 }
  0x25   :  { %881 = vmatmul.msk.f32.gmra.mxu2 %vm121_vm1, %v92_v21 }
  0x29   :  { %897 = vmatmul.msk.f32.gmra.mxu3 %vm121_vm1, %v108_v38 }
  0x2b   :  { %850 = vmatmul.msk.f32.gmra.mxu0 %vm121_vm1, %v61_v13 }
  0x2c   :  { %866 = vmatmul.msk.f32.gmra.mxu1 %vm121_vm1, %v77_v14 }
  0x2d   :  { %882 = vmatmul.msk.f32.gmra.mxu2 %vm121_vm1, %v93_v25 }
  0x31   :  { %898 = vmatmul.msk.f32.gmra.mxu3 %vm121_vm1, %v109_v42 }
  0x33   :  { %851 = vmatmul.msk.f32.gmra.mxu0 %vm121_vm1, %v62_v16 }
  0x34   :  { %867 = vmatmul.msk.f32.gmra.mxu1 %vm121_vm1, %v78_v17 }
  0x35   :  { %883 = vmatmul.msk.f32.gmra.mxu2 %vm121_vm1, %v94_v29 }
  0x39   :  { %899 = vmatmul.msk.f32.gmra.mxu3 %vm121_vm1, %v110_v46 }
  0x3b   :  { %852 = vmatmul.msk.f32.gmra.mxu0 %vm121_vm1, %v63_v19 }
  0x3c   :  { %868 = vmatmul.msk.f32.gmra.mxu1 %vm121_vm1, %v79_v20 }
  0x3d   :  { %884 = vmatmul.msk.f32.gmra.mxu2 %vm121_vm1, %v95_v33 }
  0x41   :  { %900 = vmatmul.msk.f32.gmra.mxu3 %vm121_vm1, %v111_v50 }
  0x43   :  { %853 = vmatmul.msk.f32.gmra.mxu0 %vm121_vm1, %v64_v23 }
  0x44   :  { %869 = vmatmul.msk.f32.gmra.mxu1 %vm121_vm1, %v80_v24 }
  0x45   :  { %885 = vmatmul.msk.f32.gmra.mxu2 %vm121_vm1, %v96_v37 }
  0x49   :  { %901 = vmatmul.msk.f32.gmra.mxu3 %vm121_vm1, %v112_v54 }
  0x4b   :  { %854 = vmatmul.msk.f32.gmra.mxu0 %vm121_vm1, %v65_v27 }
  0x4c   :  { %870 = vmatmul.msk.f32.gmra.mxu1 %vm121_vm1, %v81_v28 }
  0x4d   :  { %886 = vmatmul.msk.f32.gmra.mxu2 %vm121_vm1, %v97_v41 }
  0x51   :  { %902 = vmatmul.msk.f32.gmra.mxu3 %vm121_vm1, %v113_v58 }
  0x53   :  { %855 = vmatmul.msk.f32.gmra.mxu0 %vm121_vm1, %v66_v31 }
  0x54   :  { %871 = vmatmul.msk.f32.gmra.mxu1 %vm121_vm1, %v82_v32 }
  0x55   :  { %887 = vmatmul.msk.f32.gmra.mxu2 %vm121_vm1, %v98_v45 }
  0x59   :  { %903 = vmatmul.msk.f32.gmra.mxu3 %vm121_vm1, %v114_v2 }
  0x5b   :  { %856 = vmatmul.msk.f32.gmra.mxu0 %vm121_vm1, %v67_v35 }
  0x5c   :  { %872 = vmatmul.msk.f32.gmra.mxu1 %vm121_vm1, %v83_v36 }
  0x5d   :  { %888 = vmatmul.msk.f32.gmra.mxu2 %vm121_vm1, %v99_v49 }
  0x61   :  { %904 = vmatmul.msk.f32.gmra.mxu3 %vm121_vm1, %v115_v9 }
  0x63   :  { %857 = vmatmul.msk.f32.gmra.mxu0 %vm121_vm1, %v68_v39 }
  0x64   :  { %873 = vmatmul.msk.f32.gmra.mxu1 %vm121_vm1, %v84_v40 }
  0x65   :  { %889 = vmatmul.msk.f32.gmra.mxu2 %vm121_vm1, %v100_v53 }
  0x69   :  { %905 = vmatmul.msk.f32.gmra.mxu3 %vm121_vm1, %v116_v15 }
  0x6b   :  { %858 = vmatmul.msk.f32.gmra.mxu0 %vm121_vm1, %v69_v43 }
  0x6c   :  { %874 = vmatmul.msk.f32.gmra.mxu1 %vm121_vm1, %v85_v44 }
  0x6d   :  { %890 = vmatmul.msk.f32.gmra.mxu2 %vm121_vm1, %v101_v57 }
  0x71   :  { %906 = vmatmul.msk.f32.gmra.mxu3 %vm121_vm1, %v117_v22 }
  0x73   :  { %859 = vmatmul.msk.f32.gmra.mxu0 %vm121_vm1, %v70_v47 }
  0x74   :  { %875 = vmatmul.msk.f32.gmra.mxu1 %vm121_vm1, %v86_v48 }
  0x75   :  { %891 = vmatmul.msk.f32.gmra.mxu2 %vm121_vm1, %v102_v1 }
  0x79   :  { %907 = vmatmul.msk.f32.gmra.mxu3 %vm121_vm1, %v118_v26 }
  0x7b   :  { %860 = vmatmul.msk.f32.gmra.mxu0 %vm121_vm1, %v71_v51 }
  0x7c   :  { %876 = vmatmul.msk.f32.gmra.mxu1 %vm121_vm1, %v87_v52 }
  0x7d   :  { %892 = vmatmul.msk.f32.gmra.mxu2 %vm121_vm1, %v103_v8 }
  0x80   :  { %v335_v55 = vpop.f32.mrf.mxu0 }
  0x81   :  { %527 = vst [vmem:[%s1679_s2] sm:$0xff] %v335_v55  ;;  %v1160_v56 = vpop.f32.mrf.mxu1  ;;  %v660_v60 = vmul.f32 %v335_v55, %v335_v55  ;;  %908 = vmatmul.msk.f32.gmra.mxu3 %vm121_vm1, %v119_v30 }
  0x82   :  { %543 = vst [vmem:[%s1679_s2 + $0x80] sm:$0xff] %v1160_v56 }
  0x88   :  { %v338_v59 = vpop.f32.mrf.mxu0  ;;  %v1221_v17 = vpop.f32.mrf.mxu2 }
  0x89   :  { %528 = vst [vmem:[%s1679_s2 + $0x8] sm:$0xff] %v338_v59  ;;  %v591_v61 = vadd.f32 %v338_v59, %v335_v55  ;;  %v661_v62 = vmul.f32 %v338_v59, %v338_v59  ;;  %v1177_v63 = vpop.f32.mrf.mxu1 }
  0x8a   :  { %544 = vst [vmem:[%s1679_s2 + $0x88] sm:$0xff] %v1177_v63 }
  0x8b   :  { %v724_v0 = vadd.f32 %v661_v62, %v660_v60  ;;  %559 = vst [vmem:[%s1679_s2 + $0x100] sm:$0xff] %v1221_v17 }
  0x8c   :  { %v1307_v37 = vpop.f32.mrf.mxu3 }
  0x8d   :  { %575 = vst [vmem:[%s1679_s2 + $0x180] sm:$0xff] %v1307_v37 }
  0x90   :  { %v341_v3 = vpop.f32.mrf.mxu0  ;;  %v1246_v24 = vpop.f32.mrf.mxu2 }
  0x91   :  { %529 = vst [vmem:[%s1679_s2 + $0x10] sm:$0xff] %v341_v3  ;;  %v592_v4 = vadd.f32 %v591_v61, %v341_v3  ;;  %v662_v5 = vmul.f32 %v341_v3, %v341_v3  ;;  %v1194_v6 = vpop.f32.mrf.mxu1 }
  0x92   :  { %545 = vst [vmem:[%s1679_s2 + $0x90] sm:$0xff] %v1194_v6 }
  0x93   :  { %v725_v7 = vadd.f32 %v724_v0, %v662_v5  ;;  %560 = vst [vmem:[%s1679_s2 + $0x108] sm:$0xff] %v1246_v24 }
  0x94   :  { %v1328_v41 = vpop.f32.mrf.mxu3 }
  0x95   :  { %576 = vst [vmem:[%s1679_s2 + $0x188] sm:$0xff] %v1328_v41 }
  0x98   :  { %v344_v10 = vpop.f32.mrf.mxu0  ;;  %v1266_v28 = vpop.f32.mrf.mxu2 }
  0x99   :  { %530 = vst [vmem:[%s1679_s2 + $0x18] sm:$0xff] %v344_v10  ;;  %v593_v11 = vadd.f32 %v592_v4, %v344_v10  ;;  %v663_v12 = vmul.f32 %v344_v10, %v344_v10  ;;  %v1211_v13 = vpop.f32.mrf.mxu1 }
  0x9a   :  { %546 = vst [vmem:[%s1679_s2 + $0x98] sm:$0xff] %v1211_v13 }
  0x9b   :  { %v726_v14 = vadd.f32 %v725_v7, %v663_v12  ;;  %561 = vst [vmem:[%s1679_s2 + $0x110] sm:$0xff] %v1266_v28 }
  0x9c   :  { %v1349_v45 = vpop.f32.mrf.mxu3 }
  0x9d   :  { %577 = vst [vmem:[%s1679_s2 + $0x190] sm:$0xff] %v1349_v45 }
  0xa0   :  { %v347_v16 = vpop.f32.mrf.mxu0  ;;  %v1285_v32 = vpop.f32.mrf.mxu2 }
  0xa1   :  { %531 = vst [vmem:[%s1679_s2 + $0x20] sm:$0xff] %v347_v16  ;;  %v1226_v18 = vadd.f32 %v593_v11, %v347_v16  ;;  %v664_v19 = vmul.f32 %v347_v16, %v347_v16  ;;  %v1228_v20 = vpop.f32.mrf.mxu1 }
  0xa2   :  { %547 = vst [vmem:[%s1679_s2 + $0xa0] sm:$0xff] %v1228_v20 }
  0xa3   :  { %v1234_v21 = vadd.f32 %v726_v14, %v664_v19  ;;  %562 = vst [vmem:[%s1679_s2 + $0x118] sm:$0xff] %v1285_v32 }
  0xa4   :  { %v1370_v49 = vpop.f32.mrf.mxu3 }
  0xa5   :  { %578 = vst [vmem:[%s1679_s2 + $0x198] sm:$0xff] %v1370_v49 }
  0xa8   :  { %v1244_v23 = vpop.f32.mrf.mxu0  ;;  %v1300_v35 = vpop.f32.mrf.mxu2 }
  0xa9   :  { %532 = vst [vmem:[%s1679_s2 + $0x28] sm:$0xff] %v1244_v23  ;;  %v1252_v25 = vpop.f32.mrf.mxu1  ;;  %v665_v54 = vmul.f32 %v1244_v23, %v1244_v23  ;;  %v595_v55 = vadd.f32 %v1226_v18, %v1244_v23 }
  0xaa   :  { %548 = vst [vmem:[%s1679_s2 + $0xa8] sm:$0xff] %v1252_v25 }
  0xab   :  { %563 = vst [vmem:[%s1679_s2 + $0x120] sm:$0xff] %v1300_v35  ;;  %v728_v58 = vadd.f32 %v1234_v21, %v665_v54 }
  0xac   :  { %v1391_v53 = vpop.f32.mrf.mxu3 }
  0xad   :  { %579 = vst [vmem:[%s1679_s2 + $0x1a0] sm:$0xff] %v1391_v53 }
  0xb0   :  { %v353_v27 = vpop.f32.mrf.mxu0  ;;  %v1321_v39 = vpop.f32.mrf.mxu2 }
  0xb1   :  { %533 = vst [vmem:[%s1679_s2 + $0x30] sm:$0xff] %v353_v27  ;;  %v1271_v29 = vpop.f32.mrf.mxu1  ;;  %v666_v57 = vmul.f32 %v353_v27, %v353_v27  ;;  %v596_v59 = vadd.f32 %v595_v55, %v353_v27 }
  0xb2   :  { %549 = vst [vmem:[%s1679_s2 + $0xb0] sm:$0xff] %v1271_v29 }
  0xb3   :  { %564 = vst [vmem:[%s1679_s2 + $0x128] sm:$0xff] %v1321_v39  ;;  %v729_v0 = vadd.f32 %v728_v58, %v666_v57 }
  0xb4   :  { %v1417_v4 = vpop.f32.mrf.mxu3 }
  0xb5   :  { %580 = vst [vmem:[%s1679_s2 + $0x1a8] sm:$0xff] %v1417_v4 }
  0xb8   :  { %v356_v31 = vpop.f32.mrf.mxu0  ;;  %v1342_v43 = vpop.f32.mrf.mxu2 }
  0xb9   :  { %534 = vst [vmem:[%s1679_s2 + $0x38] sm:$0xff] %v356_v31  ;;  %v1290_v33 = vpop.f32.mrf.mxu1  ;;  %v667_v60 = vmul.f32 %v356_v31, %v356_v31  ;;  %v597_v1 = vadd.f32 %v596_v59, %v356_v31 }
  0xba   :  { %550 = vst [vmem:[%s1679_s2 + $0xb8] sm:$0xff] %v1290_v33 }
  0xbb   :  { %565 = vst [vmem:[%s1679_s2 + $0x130] sm:$0xff] %v1342_v43  ;;  %v730_v5 = vadd.f32 %v729_v0, %v667_v60 }
  0xbc   :  { %v1438_v26 = vpop.f32.mrf.mxu3 }
  0xbd   :  { %581 = vst [vmem:[%s1679_s2 + $0x1b0] sm:$0xff] %v1438_v26 }
  0xc0   :  { %v359_v34 = vpop.f32.mrf.mxu0  ;;  %v1363_v47 = vpop.f32.mrf.mxu2 }
  0xc1   :  { %535 = vst [vmem:[%s1679_s2 + $0x40] sm:$0xff] %v359_v34  ;;  %v1305_v36 = vpop.f32.mrf.mxu1  ;;  %v668_v2 = vmul.f32 %v359_v34, %v359_v34  ;;  %v598_v7 = vadd.f32 %v597_v1, %v359_v34 }
  0xc2   :  { %551 = vst [vmem:[%s1679_s2 + $0xc0] sm:$0xff] %v1305_v36 }
  0xc3   :  { %566 = vst [vmem:[%s1679_s2 + $0x138] sm:$0xff] %v1363_v47  ;;  %v731_v9 = vadd.f32 %v730_v5, %v668_v2  ;;  %v677_v5 = vmul.f32 %v1177_v63, %v1177_v63 }
  0xc4   :  { %v1459_v0 = vpop.f32.mrf.mxu3 }
  0xc5   :  { %582 = vst [vmem:[%s1679_s2 + $0x1b8] sm:$0xff] %v1459_v0 }
  0xc8   :  { %v362_v38 = vpop.f32.mrf.mxu0  ;;  %v1384_v51 = vpop.f32.mrf.mxu2 }
  0xc9   :  { %536 = vst [vmem:[%s1679_s2 + $0x48] sm:$0xff] %v362_v38  ;;  %v1326_v40 = vpop.f32.mrf.mxu1  ;;  %v669_v8 = vmul.f32 %v362_v38, %v362_v38  ;;  %v599_v10 = vadd.f32 %v598_v7, %v362_v38 }
  0xca   :  { %552 = vst [vmem:[%s1679_s2 + $0xc8] sm:$0xff] %v1326_v40 }
  0xcb   :  { %567 = vst [vmem:[%s1679_s2 + $0x140] sm:$0xff] %v1384_v51  ;;  %v732_v12 = vadd.f32 %v731_v9, %v669_v8 }
  0xd0   :  { %v365_v42 = vpop.f32.mrf.mxu0  ;;  %v1410_v62 = vpop.f32.mrf.mxu2 }
  0xd1   :  { %537 = vst [vmem:[%s1679_s2 + $0x50] sm:$0xff] %v365_v42  ;;  %v1347_v44 = vpop.f32.mrf.mxu1  ;;  %v670_v11 = vmul.f32 %v365_v42, %v365_v42  ;;  %v600_v14 = vadd.f32 %v599_v10, %v365_v42 }
  0xd2   :  { %553 = vst [vmem:[%s1679_s2 + $0xd0] sm:$0xff] %v1347_v44 }
  0xd3   :  { %568 = vst [vmem:[%s1679_s2 + $0x148] sm:$0xff] %v1410_v62  ;;  %v733_v19 = vadd.f32 %v732_v12, %v670_v11  ;;  %v679_v12 = vmul.f32 %v1211_v13, %v1211_v13 }
  0xd8   :  { %v368_v46 = vpop.f32.mrf.mxu0  ;;  %v1431_v18 = vpop.f32.mrf.mxu2 }
  0xd9   :  { %538 = vst [vmem:[%s1679_s2 + $0x58] sm:$0xff] %v368_v46  ;;  %v1368_v48 = vpop.f32.mrf.mxu1  ;;  %v671_v15 = vmul.f32 %v368_v46, %v368_v46  ;;  %v601_v21 = vadd.f32 %v600_v14, %v368_v46 }
  0xda   :  { %554 = vst [vmem:[%s1679_s2 + $0xd8] sm:$0xff] %v1368_v48 }
  0xdb   :  { %v734_v27 = vadd.f32 %v733_v19, %v671_v15  ;;  %569 = vst [vmem:[%s1679_s2 + $0x150] sm:$0xff] %v1431_v18 }
  0xe0   :  { %v371_v50 = vpop.f32.mrf.mxu0  ;;  %v1452_v57 = vpop.f32.mrf.mxu2 }
  0xe1   :  { %539 = vst [vmem:[%s1679_s2 + $0x60] sm:$0xff] %v371_v50  ;;  %v1389_v52 = vpop.f32.mrf.mxu1  ;;  %v672_v22 = vmul.f32 %v371_v50, %v371_v50  ;;  %v602_v30 = vadd.f32 %v601_v21, %v371_v50 }
  0xe2   :  { %555 = vst [vmem:[%s1679_s2 + $0xe0] sm:$0xff] %v1389_v52 }
  0xe3   :  { %v735_v34 = vadd.f32 %v734_v27, %v672_v22  ;;  %570 = vst [vmem:[%s1679_s2 + $0x158] sm:$0xff] %v1452_v57  ;;  %v682_v27 = vmul.f32 %v1271_v29, %v1271_v29 }
  0xe8   :  { %v374_v61 = vpop.f32.mrf.mxu0  ;;  %v1482_v11 = vpop.f32.mrf.mxu2 }
  0xe9   :  { %540 = vst [vmem:[%s1679_s2 + $0x68] sm:$0xff] %v374_v61  ;;  %v1415_v3 = vpop.f32.mrf.mxu1  ;;  %v673_v31 = vmul.f32 %v374_v61, %v374_v61  ;;  %v603_v38 = vadd.f32 %v602_v30, %v374_v61  ;;  %v676_v61 = vmul.f32 %v1160_v56, %v1160_v56 }
  0xea   :  { %556 = vst [vmem:[%s1679_s2 + $0xe8] sm:$0xff] %v1415_v3 }
  0xeb   :  { %v736_v46 = vadd.f32 %v735_v34, %v673_v31  ;;  %571 = vst [vmem:[%s1679_s2 + $0x160] sm:$0xff] %v1482_v11 }
  0xf0   :  { %v377_v16 = vpop.f32.mrf.mxu0  ;;  %v1506_v34 = vpop.f32.mrf.mxu2 }
  0xf1   :  { %541 = vst [vmem:[%s1679_s2 + $0x70] sm:$0xff] %v377_v16  ;;  %v1436_v23 = vpop.f32.mrf.mxu1  ;;  %v674_v42 = vmul.f32 %v377_v16, %v377_v16  ;;  %v604_v54 = vadd.f32 %v603_v38, %v377_v16  ;;  %v683_v38 = vmul.f32 %v1290_v33, %v1290_v33 }
  0xf2   :  { %557 = vst [vmem:[%s1679_s2 + $0xf0] sm:$0xff] %v1436_v23 }
  0xf3   :  { %v737_v50 = vadd.f32 %v736_v46, %v674_v42  ;;  %572 = vst [vmem:[%s1679_s2 + $0x168] sm:$0xff] %v1506_v34 }
  0xf8   :  { %v380_v55 = vpop.f32.mrf.mxu0 }
  0xf9   :  { %542 = vst [vmem:[%s1679_s2 + $0x78] sm:$0xff] %v380_v55  ;;  %v605_v58 = vadd.f32 %v604_v54, %v380_v55  ;;  %v675_v59 = vmul.f32 %v380_v55, %v380_v55  ;;  %v1457_v60 = vpop.f32.mrf.mxu1 }
  0xfa   :  { %558 = vst [vmem:[%s1679_s2 + $0xf8] sm:$0xff] %v1457_v60 }
  0xfb   :  { %v606_v1 = vadd.f32 %v605_v58, %v1160_v56  ;;  %v738_v2 = vadd.f32 %v737_v50, %v675_v59  ;;  %v678_v56 = vmul.f32 %v1194_v6, %v1194_v6  ;;  %v686_v58 = vmul.f32 %v1347_v44, %v1347_v44 }
  0xfd   :  { %v607_v7 = vadd.f32 %v606_v1, %v1177_v63  ;;  %v739_v8 = vadd.f32 %v738_v2, %v676_v61  ;;  %v1491_v63 = vpop.f32.mrf.mxu3  ;;  %v1530_v1 = vpop.f32.mrf.mxu2 }
  0xfe   :  { %583 = vst [vmem:[%s1679_s2 + $0x1c0] sm:$0xff] %v1491_v63 }
  0xff   :  { %v608_v9 = vadd.f32 %v607_v7, %v1194_v6  ;;  %v740_v10 = vadd.f32 %v739_v8, %v677_v5  ;;  %v680_v6 = vmul.f32 %v1228_v20, %v1228_v20  ;;  %573 = vst [vmem:[%s1679_s2 + $0x170] sm:$0xff] %v1530_v1  ;;  %v688_v8 = vmul.f32 %v1389_v52, %v1389_v52 }
 0x101   :  { %v609_v14 = vadd.f32 %v608_v9, %v1211_v13  ;;  %v741_v15 = vadd.f32 %v740_v10, %v678_v56  ;;  %v681_v13 = vmul.f32 %v1252_v25, %v1252_v25  ;;  %v689_v9 = vmul.f32 %v1415_v3, %v1415_v3 }
 0x103   :  { %v610_v16 = vadd.f32 %v609_v14, %v1228_v20  ;;  %v742_v19 = vadd.f32 %v741_v15, %v679_v12  ;;  %v690_v14 = vmul.f32 %v1436_v23, %v1436_v23  ;;  %v691_v15 = vmul.f32 %v1457_v60, %v1457_v60 }
 0x105   :  { %v611_v21 = vadd.f32 %v610_v16, %v1252_v25  ;;  %v743_v22 = vadd.f32 %v742_v19, %v680_v6  ;;  %v1515_v25 = vpop.f32.mrf.mxu3  ;;  %v476_v6 = vpop.f32.mrf.mxu2 }
 0x106   :  { %584 = vst [vmem:[%s1679_s2 + $0x1c8] sm:$0xff] %v1515_v25 }
 0x107   :  { %v744_v30 = vadd.f32 %v743_v22, %v681_v13  ;;  %v612_v31 = vadd.f32 %v611_v21, %v1271_v29  ;;  %v684_v29 = vmul.f32 %v1305_v36, %v1305_v36  ;;  %574 = vst [vmem:[%s1679_s2 + $0x178] sm:$0xff] %v476_v6 }
 0x109   :  { %v613_v20 = vadd.f32 %v612_v31, %v1290_v33  ;;  %v745_v42 = vadd.f32 %v744_v30, %v682_v27  ;;  %v685_v33 = vmul.f32 %v1326_v40, %v1326_v40  ;;  %v694_v27 = vmul.f32 %v1266_v28, %v1266_v28 }
 0x10b   :  { %v614_v46 = vadd.f32 %v613_v20, %v1305_v36  ;;  %v746_v54 = vadd.f32 %v745_v42, %v683_v38  ;;  %v687_v36 = vmul.f32 %v1368_v48, %v1368_v48  ;;  %v695_v38 = vmul.f32 %v1285_v32, %v1285_v32 }
 0x10d   :  { %v615_v55 = vadd.f32 %v614_v46, %v1326_v40  ;;  %v747_v50 = vadd.f32 %v746_v54, %v684_v29  ;;  %v1539_v40 = vpop.f32.mrf.mxu3  ;;  %v697_v46 = vmul.f32 %v1321_v39, %v1321_v39 }
 0x10e   :  { %585 = vst [vmem:[%s1679_s2 + $0x1d0] sm:$0xff] %v1539_v40 }
 0x10f   :  { %v616_v59 = vadd.f32 %v615_v55, %v1347_v44  ;;  %v748_v61 = vadd.f32 %v747_v50, %v685_v33  ;;  %v698_v33 = vmul.f32 %v1342_v43, %v1342_v43 }
 0x111   :  { %v617_v2 = vadd.f32 %v616_v59, %v1368_v48  ;;  %v749_v5 = vadd.f32 %v748_v61, %v686_v58  ;;  %v699_v58 = vmul.f32 %v1363_v47, %v1363_v47 }
 0x113   :  { %v750_v44 = vadd.f32 %v749_v5, %v687_v36  ;;  %v618_v7 = vadd.f32 %v617_v2, %v1389_v52 }
 0x115   :  { %v751_v48 = vadd.f32 %v750_v44, %v688_v8  ;;  %v619_v56 = vadd.f32 %v618_v7, %v1415_v3  ;;  %v1560_v52 = vpop.f32.mrf.mxu3  ;;  %v692_v3 = vmul.f32 %v1221_v17, %v1221_v17  ;;  %v702_v44 = vmul.f32 %v1431_v18, %v1431_v18 }
 0x116   :  { %586 = vst [vmem:[%s1679_s2 + $0x1d8] sm:$0xff] %v1560_v52 }
 0x117   :  { %v752_v10 = vadd.f32 %v751_v48, %v689_v9  ;;  %v620_v12 = vadd.f32 %v619_v56, %v1436_v23  ;;  %v703_v56 = vmul.f32 %v1452_v57, %v1452_v57 }
 0x119   :  { %v753_v16 = vadd.f32 %v752_v10, %v690_v14  ;;  %v621_v19 = vadd.f32 %v620_v12, %v1457_v60  ;;  %v693_v60 = vmul.f32 %v1246_v24, %v1246_v24  ;;  %v704_v12 = vmul.f32 %v1482_v11, %v1482_v11 }
 0x11b   :  { %v622_v23 = vadd.f32 %v621_v19, %v1221_v17  ;;  %v754_v13 = vadd.f32 %v753_v16, %v691_v15  ;;  %v705_v15 = vmul.f32 %v1506_v34, %v1506_v34  ;;  %v706_v19 = vmul.f32 %v1530_v1, %v1530_v1 }
 0x11d   :  { %v623_v21 = vadd.f32 %v622_v23, %v1246_v24  ;;  %v755_v22 = vadd.f32 %v754_v13, %v692_v3  ;;  %v1578_v17 = vpop.f32.mrf.mxu3  ;;  %v696_v24 = vmul.f32 %v1300_v35, %v1300_v35  ;;  %v707_v3 = vmul.f32 %v476_v6, %v476_v6 }
 0x11e   :  { %587 = vst [vmem:[%s1679_s2 + $0x1e0] sm:$0xff] %v1578_v17 }
 0x11f   :  { %v624_v30 = vadd.f32 %v623_v21, %v1266_v28  ;;  %v756_v31 = vadd.f32 %v755_v22, %v693_v60  ;;  %v709_v22 = vmul.f32 %v1328_v41, %v1328_v41 }
 0x121   :  { %v625_v20 = vadd.f32 %v624_v30, %v1285_v32  ;;  %v757_v42 = vadd.f32 %v756_v31, %v694_v27 }
 0x123   :  { %v626_v29 = vadd.f32 %v625_v20, %v1300_v35  ;;  %v758_v28 = vadd.f32 %v757_v42, %v695_v38  ;;  %v711_v38 = vmul.f32 %v1370_v49, %v1370_v49 }
 0x125   :  { %v627_v54 = vadd.f32 %v626_v29, %v1321_v39  ;;  %v759_v32 = vadd.f32 %v758_v28, %v696_v24  ;;  %v1596_v35 = vpop.f32.mrf.mxu3  ;;  %v700_v39 = vmul.f32 %v1384_v51, %v1384_v51 }
 0x126   :  { %588 = vst [vmem:[%s1679_s2 + $0x1e8] sm:$0xff] %v1596_v35 }
 0x127   :  { %v760_v55 = vadd.f32 %v759_v32, %v697_v46  ;;  %v628_v50 = vadd.f32 %v627_v54, %v1342_v43  ;;  %v701_v43 = vmul.f32 %v1410_v62, %v1410_v62 }
 0x129   :  { %v629_v59 = vadd.f32 %v628_v50, %v1363_v47  ;;  %v761_v61 = vadd.f32 %v760_v55, %v698_v33 }
 0x12b   :  { %v630_v2 = vadd.f32 %v629_v59, %v1384_v51  ;;  %v762_v36 = vadd.f32 %v761_v61, %v699_v58 }
 0x12d   :  { %v631_v5 = vadd.f32 %v630_v2, %v1410_v62  ;;  %v763_v47 = vadd.f32 %v762_v36, %v700_v39  ;;  %v521_v51 = vpop.f32.mrf.mxu3  ;;  %v719_v36 = vmul.f32 %v1560_v52, %v1560_v52 }
 0x12e   :  { %589 = vst [vmem:[%s1679_s2 + $0x1f0] sm:$0xff] %v521_v51 }
 0x12f   :  { %v632_v7 = vadd.f32 %v631_v5, %v1431_v18  ;;  %v764_v8 = vadd.f32 %v763_v47, %v701_v43  ;;  %v720_v47 = vmul.f32 %v1578_v17, %v1578_v17 }
 0x131   :  { %v633_v48 = vadd.f32 %v632_v7, %v1452_v57  ;;  %v765_v9 = vadd.f32 %v764_v8, %v702_v44  ;;  %v721_v7 = vmul.f32 %v1596_v35, %v1596_v35 }
 0x133   :  { %v766_v10 = vadd.f32 %v765_v9, %v703_v56  ;;  %v634_v62 = vadd.f32 %v633_v48, %v1482_v11  ;;  %v708_v11 = vmul.f32 %v1307_v37, %v1307_v37  ;;  %v722_v48 = vmul.f32 %v521_v51, %v521_v51 }
 0x135   :  { %v767_v14 = vadd.f32 %v766_v10, %v704_v12  ;;  %v635_v18 = vadd.f32 %v634_v62, %v1506_v34  ;;  %v524_v60 = vpop.f32.mrf.mxu3  ;;  %v793_v12 = vlaneseq }
 0x136   :  { %590 = vst [vmem:[%s1679_s2 + $0x1f8] sm:$0xff] %v524_v60  ;;  %v723_v56 = vmul.f32 %v524_v60, %v524_v60 }
 0x137   :  { %v768_v16 = vadd.f32 %v767_v14, %v705_v15  ;;  %v636_v57 = vadd.f32 %v635_v18, %v1530_v1 }
 0x139   :  { %v769_v23 = vadd.f32 %v768_v16, %v706_v19  ;;  %v637_v13 = vadd.f32 %v636_v57, %v476_v6  ;;  %v710_v6 = vmul.f32 %v1349_v45, %v1349_v45 }
 0x13b   :  { %v638_v21 = vadd.f32 %v637_v13, %v1307_v37  ;;  %v770_v34 = vadd.f32 %v769_v23, %v707_v3  ;;  %v712_v37 = vmul.f32 %v1391_v53, %v1391_v53 }
 0x13d   :  { %v639_v27 = vadd.f32 %v638_v21, %v1328_v41  ;;  %v771_v1 = vadd.f32 %v770_v34, %v708_v11  ;;  %v713_v41 = vmul.f32 %v1417_v4, %v1417_v4 }
 0x13f   :  { %v640_v30 = vadd.f32 %v639_v27, %v1349_v45  ;;  %v772_v31 = vadd.f32 %v771_v1, %v709_v22  ;;  %v714_v45 = vmul.f32 %v1438_v26, %v1438_v26 }
 0x141   :  { %v641_v20 = vadd.f32 %v640_v30, %v1370_v49  ;;  %v773_v42 = vadd.f32 %v772_v31, %v710_v6  ;;  %v715_v49 = vmul.f32 %v1459_v0, %v1459_v0 }
 0x143   :  { %v642_v24 = vadd.f32 %v641_v20, %v1391_v53  ;;  %v774_v29 = vadd.f32 %v773_v42, %v711_v38  ;;  %v716_v53 = vmul.f32 %v1491_v63, %v1491_v63 }
 0x145   :  { %v643_v28 = vadd.f32 %v642_v24, %v1417_v4  ;;  %v775_v46 = vadd.f32 %v774_v29, %v712_v37  ;;  %v717_v4 = vmul.f32 %v1515_v25, %v1515_v25 }
 0x147   :  { %v776_v54 = vadd.f32 %v775_v46, %v713_v41  ;;  %v644_v32 = vadd.f32 %v643_v28, %v1438_v26  ;;  %v718_v26 = vmul.f32 %v1539_v40, %v1539_v40 }
 0x149   :  { %v645_v33 = vadd.f32 %v644_v32, %v1459_v0  ;;  %v777_v55 = vadd.f32 %v776_v54, %v714_v45 }
 0x14b   :  { %v646_v50 = vadd.f32 %v645_v33, %v1491_v63  ;;  %v778_v58 = vadd.f32 %v777_v55, %v715_v49 }
 0x14d   :  { %v647_v59 = vadd.f32 %v646_v50, %v1515_v25  ;;  %v779_v61 = vadd.f32 %v778_v58, %v716_v53 }
 0x14f   :  { %v648_v39 = vadd.f32 %v647_v59, %v1539_v40  ;;  %v780_v2 = vadd.f32 %v779_v61, %v717_v4 }
 0x151   :  { %v649_v0 = vadd.f32 %v648_v39, %v1560_v52  ;;  %v781_v43 = vadd.f32 %v780_v2, %v718_v26 }
 0x153   :  { %v782_v63 = vadd.f32 %v781_v43, %v719_v36  ;;  %v650_v5 = vadd.f32 %v649_v0, %v1578_v17  ;;  %v794_v17 = vshrl.u32 %v793_v12, 7 }
 0x155   :  { %v783_v25 = vadd.f32 %v782_v63, %v720_v47  ;;  %v651_v44 = vadd.f32 %v650_v5, %v1596_v35  ;;  %vm795_vm2 = vcmp.eq.s32.totalorder %v794_v17, 0 }
 0x157   :  { %v784_v40 = vadd.f32 %v783_v25, %v721_v7  ;;  %v652_v8 = vadd.f32 %v651_v44, %v521_v51 }
 0x159   :  { %v785_v9 = vadd.f32 %v784_v40, %v722_v48  ;;  %v653_v10 = vadd.f32 %v652_v8, %v524_v60 }
 0x15b   :  { %v654_v52 = vrot.slane %v653_v10, 4  ;;  %v786_v62 = vadd.f32 %v785_v9, %v723_v56 }
 0x15d   :  { %v655_v14 = vadd.f32 %v654_v52, %v653_v10  ;;  %v787_v18 = vrot.slane %v786_v62, 4 }
 0x15f   :  { %v656_v15 = vrot.slane %v655_v14, 2  ;;  %v788_v16 = vadd.f32 %v787_v18, %v786_v62 }
 0x161   :  { %v657_v57 = vadd.f32 %v656_v15, %v655_v14  ;;  %v789_v19 = vrot.slane %v788_v16, 2 }
 0x163   :  { %v658_v3 = vrot.slane %v657_v57, 1  ;;  %v790_v23 = vadd.f32 %v789_v19, %v788_v16 }
 0x165   :  { %v659_v35 = vadd.f32 %v658_v3, %v657_v57  ;;  %v791_v13 = vrot.slane %v790_v23, 1 }
 0x167   :  { %v792_v11 = vadd.f32 %v791_v13, %v790_v23  ;;  %v797_v51 = vsel %vm795_vm2, %v659_v35, 0.0 }
 0x168   :  { %799 = vst [vmem:[%s1680_s3] sm:$0xff] %v797_v51 }
 0x169   :  { %v801_v21 = vsel %vm795_vm2, %v792_v11, 0.0 }
 0x16a   :  { %803 = vst [vmem:[%s1681_s4] sm:$0xff] %v801_v21 }

</bundles_post_ra>
